<compile_context>
chip_gen: v6e
topology: v6e:2x2x1
jax: 0.10.0
libtpu: 0.0.40
codegen_flags: <defaults>
</compile_context>

<pallas_src>
import jax
import jax.numpy as jnp
from jax.experimental import pallas as pl
from jax.experimental.pallas import tpu as pltpu


# ----------------------------- Pallas kernel -------------------------------

def fused_conv_perturb_kernel(w_ref, b_ref, m_ref, x_ref, o_ref):
    # w_ref: (Cout, Cin)        b_ref: (Cout, 1)
    # m_ref: (Mb, T)            x_ref: (N*Cin, T)      o_ref: (Mb, Cout, T)
    n_cin, t = x_ref.shape
    mb = o_ref.shape[0]
    cin = w_ref.shape[1]
    n_pert = n_cin // cin

    w = w_ref[...].astype(jnp.float32)          # tiny, resident across steps
    b = b_ref[...].astype(jnp.float32)

    # Mb and N are small & static -> plain unrolled Python loops.
    for m in range(mb):
        # Interpolation index, clamped so out-of-range masks behave like a
        # clamped gather.  (1, T) broadcasts cleanly against (Cin, T).
        idx = jnp.clip(m_ref[pl.ds(m, 1), :].astype(jnp.float32), 0.0, 1.0) \
              * float(n_pert - 1)                                   # (1, T)

        # Blend x in Cin-space: xb = sum_n tent_n(idx) * x[n]   (linearity).
        xb = None
        for n in range(n_pert):
            w_n = jnp.maximum(0.0, 1.0 - jnp.abs(idx - float(n)))   # (1, T)
            x_n = x_ref[pl.ds(n * cin, cin), :].astype(jnp.float32) # (Cin, T)
            contrib = x_n * w_n
            xb = contrib if xb is None else xb + contrib

        # One 1x1-conv matmul per mask row (MXU), bias added once.
        y = jnp.dot(w, xb, preferred_element_type=jnp.float32) + b  # (Cout, T)
        o_ref[m] = y.astype(o_ref.dtype)


# ------------------------------- wrapper ------------------------------------

def _round_up(x, m):
    return ((x + m - 1) // m) * m


def _pick_tile_hw(hw, bytes_per_lane, vmem_budget_bytes=8 << 20, max_tile=32768):
    """Lane tile: multiple of 128, sized from a per-step VMEM budget.

    Capped so the spatial grid keeps >= 2 steps when HW allows (v7x megacore),
    and so the double-buffered per-step footprint stays inside the budget
    (well under the 32 MiB default scoped VMEM on v5e/v6e/v7x).
    Returns (tile_hw, hw_padded) with hw_padded % tile_hw == 0.
    """
    hw128 = _round_up(hw, 128)
    cap = vmem_budget_bytes // (bytes_per_lane * 2)      # 2x: double buffering
    cap = max(128, (cap // 128) * 128)
    cap = min(cap, max_tile)
    if hw128 >= 256:
        # keep >= 2 grid steps so "parallel" can split across TensorCores
        cap = min(cap, max(128, (hw128 // 2 // 128) * 128))
    tile = min(cap, hw128)
    hw_pad = _round_up(hw, tile)
    return tile, hw_pad


def perturbation_layer_forward(x, mask, w, b, tile_hw=None,
                               vmem_budget_bytes=8 << 20):
    """forward() with perturb_after=True: 1x1 conv + perturb_dual, fused.

    x:    (N, Cin, H, W)   N > 1 perturbations
    mask: (Mb, 1, H, W)    Mb in {1, 2}, values in [0, 1]
    w:    (Cout, Cin)      b: (Cout,)
    returns (Mb, Cout, H, W)
    """
    N, Cin, H, W = x.shape
    Mb = mask.shape[0]
    Cout = w.shape[0]
    HW = H * W

    itemsize = jnp.dtype(x.dtype).itemsize
    bytes_per_lane = (N * Cin + Mb + Mb * Cout) * itemsize
    if tile_hw is None:
        tile_hw, hw_pad = _pick_tile_hw(HW, bytes_per_lane, vmem_budget_bytes)
    else:
        assert tile_hw % 128 == 0
        hw_pad = _round_up(HW, tile_hw)
    num_tiles = hw_pad // tile_hw

    # Sublane-dense layouts: x as a (N*Cin, HW) slab, mask as (Mb, HW).
    x2 = x.reshape(N * Cin, HW)
    m2 = mask.reshape(Mb, HW)
    b2 = b.reshape(Cout, 1)

    if hw_pad != HW:  # pad lane axis up to a multiple of the tile
        x2 = jnp.pad(x2, ((0, 0), (0, hw_pad - HW)))
        m2 = jnp.pad(m2, ((0, 0), (0, hw_pad - HW)))

    cost = pl.CostEstimate(
        flops=2 * Mb * Cout * Cin * HW + Mb * N * (2 * Cin + 4) * HW,
        transcendentals=0,
        bytes_accessed=(N * Cin + Mb + Mb * Cout) * HW * itemsize,
    )

    out = pl.pallas_call(
        fused_conv_perturb_kernel,
        out_shape=jax.ShapeDtypeStruct((Mb, Cout, hw_pad), x.dtype),
        grid_spec=pltpu.PrefetchScalarGridSpec(
            num_scalar_prefetch=0,
            grid=(num_tiles,),                                        # spatial tiles
            in_specs=[
                pl.BlockSpec((Cout, Cin), lambda t: (0, 0)),          # weights (resident)
                pl.BlockSpec((Cout, 1), lambda t: (0, 0)),            # bias (resident)
                pl.BlockSpec((Mb, tile_hw), lambda t: (0, t)),        # both mask rows
                pl.BlockSpec((N * Cin, tile_hw), lambda t: (0, t)),   # x read once
            ],
            out_specs=pl.BlockSpec((Mb, Cout, tile_hw), lambda t: (0, 0, t)),
        ),
        compiler_params=pltpu.CompilerParams(
            dimension_semantics=("parallel",)),                       # megacore on v7x
        cost_estimate=cost,
    )(w, b2, m2, x2)

    out = out[:, :, :HW]
    return out.reshape(Mb, Cout, H, W)


# ------------------------ pure-JAX reference (check) ------------------------

def ref_forward(x, mask, w, b):
    y = jnp.einsum("oi,nihw->nohw", w, x) + b[None, :, None, None]
    N = y.shape[0]
    outs = []
    for mrow in mask:                                 # (1, H, W)
        idx = mrow[None] * (N - 1)                    # (1, 1, H, W)
        idx_f = jnp.floor(idx)
        frac = idx - idx_f
        idx_fi = idx_f.astype(jnp.int32)
        idx_ci = jnp.minimum(idx_fi + 1, N - 1)
        gf = jnp.take_along_axis(y, jnp.broadcast_to(idx_fi, (1,) + y.shape[1:]), axis=0)
        gc = jnp.take_along_axis(y, jnp.broadcast_to(idx_ci, (1,) + y.shape[1:]), axis=0)
        outs.append(gf * (1.0 - frac) + gc * frac)
    return jnp.concatenate(outs, axis=0)


# --------------------------------- main --------------------------------------

if __name__ == "__main__":
    key = jax.random.PRNGKey(0)

    # --- test 1: lane-aligned spatial size ------------------------------------
    k1, k2, k3, k4 = jax.random.split(key, 4)
    N, Cin, Cout, H, W, Mb = 4, 4, 8, 64, 64, 2          # HW=4096 -> tile=2048, 2 steps
    x = jax.random.normal(k1, (N, Cin, H, W), jnp.float32)
    mask = jax.random.uniform(k2, (Mb, 1, H, W), jnp.float32)      # in [0, 1)
    w = jax.random.normal(k3, (Cout, Cin), jnp.float32) * 0.1
    b = jax.random.normal(k4, (Cout,), jnp.float32) * 0.1

    out = jax.block_until_ready(perturbation_layer_forward(x, mask, w, b))
    ref = ref_forward(x, mask, w, b)
    assert out.shape == (Mb, Cout, H, W), out.shape
    err = float(jnp.max(jnp.abs(out - ref)))
    assert jnp.allclose(out, ref, atol=1e-5, rtol=1e-5), err

    # --- test 2: non-128-divisible spatial size (padding path) ----------------
    k5, k6, k7, k8 = jax.random.split(jax.random.PRNGKey(1), 4)
    N2, Cin2, Cout2, H2, W2, Mb2 = 3, 4, 8, 10, 13, 2    # HW=130 -> padded to 256
    x2 = jax.random.normal(k5, (N2, Cin2, H2, W2), jnp.float32)
    mask2 = jax.random.uniform(k6, (Mb2, 1, H2, W2), jnp.float32)
    w2 = jax.random.normal(k7, (Cout2, Cin2), jnp.float32) * 0.1
    b2 = jax.random.normal(k8, (Cout2,), jnp.float32) * 0.1

    out2 = jax.block_until_ready(perturbation_layer_forward(x2, mask2, w2, b2))
    ref2 = ref_forward(x2, mask2, w2, b2)
    assert out2.shape == (Mb2, Cout2, H2, W2), out2.shape
    err2 = float(jnp.max(jnp.abs(out2 - ref2)))
    assert jnp.allclose(out2, ref2, atol=1e-5, rtol=1e-5), err2

    print("KERNEL_OK")
</pallas_src>

<mosaic_0001>
module attributes {stable_mosaic.version = 11 : i64} {
  func.func @fused_conv_perturb_kernel(%arg0: i32, %arg1: memref<8x4xf32, #tpu.memory_space<vmem>>, %arg2: memref<8x1xf32, #tpu.memory_space<vmem>>, %arg3: memref<2x2048xf32, #tpu.memory_space<vmem>>, %arg4: memref<16x2048xf32, #tpu.memory_space<vmem>>, %arg5: memref<2x8x2048xf32, #tpu.memory_space<vmem>>) attributes {dimension_semantics = [#tpu.dimension_semantics<parallel>], iteration_bounds = array<i64: 2>, scalar_prefetch = 0 : i64, scratch_operands = 0 : i64, tpu.core_type = #tpu.core_type<tc>, window_params = [{pipeline_mode = #tpu.pipeline_mode<synchronous>, transform_indices = @transform_0, window_bounds = array<i64: 8, 4>}, {pipeline_mode = #tpu.pipeline_mode<synchronous>, transform_indices = @transform_1, window_bounds = array<i64: 8, 1>}, {transform_indices = @transform_2, window_bounds = array<i64: 2, 2048>}, {transform_indices = @transform_3, window_bounds = array<i64: 16, 2048>}, {transform_indices = @transform_4, window_bounds = array<i64: 2, 8, 2048>}]} {
    %c0 = arith.constant 0 : index
    %c0_0 = arith.constant 0 : index
    %0 = vector.load %arg1[%c0, %c0_0] : memref<8x4xf32, #tpu.memory_space<vmem>>, vector<8x4xf32>
    %c0_1 = arith.constant 0 : index
    %c0_2 = arith.constant 0 : index
    %1 = vector.load %arg2[%c0_1, %c0_2] : memref<8x1xf32, #tpu.memory_space<vmem>>, vector<8x1xf32>
    %c0_3 = arith.constant 0 : index
    %c0_4 = arith.constant 0 : index
    %2 = vector.load %arg3[%c0_3, %c0_4] : memref<2x2048xf32, #tpu.memory_space<vmem>>, vector<1x2048xf32>
    %cst = arith.constant 0.000000e+00 : f32
    %cst_5 = arith.constant 1.000000e+00 : f32
    %3 = vector.broadcast %cst : f32 to vector<1x2048xf32>
    %4 = arith.maximumf %3, %2 : vector<1x2048xf32>
    %5 = vector.broadcast %cst_5 : f32 to vector<1x2048xf32>
    %6 = arith.minimumf %5, %4 : vector<1x2048xf32>
    %cst_6 = arith.constant 3.000000e+00 : f32
    %7 = vector.broadcast %cst_6 : f32 to vector<1x2048xf32>
    %8 = arith.mulf %6, %7 : vector<1x2048xf32>
    %cst_7 = arith.constant 0.000000e+00 : f32
    %9 = vector.broadcast %cst_7 : f32 to vector<1x2048xf32>
    %10 = arith.subf %8, %9 : vector<1x2048xf32>
    %11 = math.absf %10 : vector<1x2048xf32>
    %cst_8 = arith.constant 1.000000e+00 : f32
    %12 = vector.broadcast %cst_8 : f32 to vector<1x2048xf32>
    %13 = arith.subf %12, %11 : vector<1x2048xf32>
    %cst_9 = arith.constant 0.000000e+00 : f32
    %14 = vector.broadcast %cst_9 : f32 to vector<1x2048xf32>
    %15 = arith.maximumf %14, %13 : vector<1x2048xf32>
    %c0_10 = arith.constant 0 : index
    %c0_11 = arith.constant 0 : index
    %16 = vector.load %arg4[%c0_10, %c0_11] : memref<16x2048xf32, #tpu.memory_space<vmem>>, vector<4x2048xf32>
    %17 = vector.broadcast %15 : vector<1x2048xf32> to vector<4x2048xf32>
    %18 = arith.mulf %16, %17 : vector<4x2048xf32>
    %cst_12 = arith.constant 1.000000e+00 : f32
    %19 = vector.broadcast %cst_12 : f32 to vector<1x2048xf32>
    %20 = arith.subf %8, %19 : vector<1x2048xf32>
    %21 = math.absf %20 : vector<1x2048xf32>
    %cst_13 = arith.constant 1.000000e+00 : f32
    %22 = vector.broadcast %cst_13 : f32 to vector<1x2048xf32>
    %23 = arith.subf %22, %21 : vector<1x2048xf32>
    %cst_14 = arith.constant 0.000000e+00 : f32
    %24 = vector.broadcast %cst_14 : f32 to vector<1x2048xf32>
    %25 = arith.maximumf %24, %23 : vector<1x2048xf32>
    %c4 = arith.constant 4 : index
    %c0_15 = arith.constant 0 : index
    %26 = vector.load %arg4[%c4, %c0_15] : memref<16x2048xf32, #tpu.memory_space<vmem>>, vector<4x2048xf32>
    %27 = vector.broadcast %25 : vector<1x2048xf32> to vector<4x2048xf32>
    %28 = arith.mulf %26, %27 : vector<4x2048xf32>
    %29 = arith.addf %18, %28 : vector<4x2048xf32>
    %cst_16 = arith.constant 2.000000e+00 : f32
    %30 = vector.broadcast %cst_16 : f32 to vector<1x2048xf32>
    %31 = arith.subf %8, %30 : vector<1x2048xf32>
    %32 = math.absf %31 : vector<1x2048xf32>
    %cst_17 = arith.constant 1.000000e+00 : f32
    %33 = vector.broadcast %cst_17 : f32 to vector<1x2048xf32>
    %34 = arith.subf %33, %32 : vector<1x2048xf32>
    %cst_18 = arith.constant 0.000000e+00 : f32
    %35 = vector.broadcast %cst_18 : f32 to vector<1x2048xf32>
    %36 = arith.maximumf %35, %34 : vector<1x2048xf32>
    %c8 = arith.constant 8 : index
    %c0_19 = arith.constant 0 : index
    %37 = vector.load %arg4[%c8, %c0_19] : memref<16x2048xf32, #tpu.memory_space<vmem>>, vector<4x2048xf32>
    %38 = vector.broadcast %36 : vector<1x2048xf32> to vector<4x2048xf32>
    %39 = arith.mulf %37, %38 : vector<4x2048xf32>
    %40 = arith.addf %29, %39 : vector<4x2048xf32>
    %cst_20 = arith.constant 3.000000e+00 : f32
    %41 = vector.broadcast %cst_20 : f32 to vector<1x2048xf32>
    %42 = arith.subf %8, %41 : vector<1x2048xf32>
    %43 = math.absf %42 : vector<1x2048xf32>
    %cst_21 = arith.constant 1.000000e+00 : f32
    %44 = vector.broadcast %cst_21 : f32 to vector<1x2048xf32>
    %45 = arith.subf %44, %43 : vector<1x2048xf32>
    %cst_22 = arith.constant 0.000000e+00 : f32
    %46 = vector.broadcast %cst_22 : f32 to vector<1x2048xf32>
    %47 = arith.maximumf %46, %45 : vector<1x2048xf32>
    %c12 = arith.constant 12 : index
    %c0_23 = arith.constant 0 : index
    %48 = vector.load %arg4[%c12, %c0_23] : memref<16x2048xf32, #tpu.memory_space<vmem>>, vector<4x2048xf32>
    %49 = vector.broadcast %47 : vector<1x2048xf32> to vector<4x2048xf32>
    %50 = arith.mulf %48, %49 : vector<4x2048xf32>
    %51 = arith.addf %40, %50 : vector<4x2048xf32>
    %cst_24 = arith.constant dense<0.000000e+00> : vector<8x2048xf32>
    %52 = tpu.matmul %0, %51, %cst_24 {dimension_numbers = #tpu.dot_dimension_numbers<[1], [0], [0], [1], [0, 0, 1, 1], [], []>} : vector<8x4xf32>, vector<4x2048xf32>, vector<8x2048xf32> -> vector<8x2048xf32>
    %53 = vector.broadcast %1 : vector<8x1xf32> to vector<8x2048xf32>
    %54 = arith.addf %52, %53 : vector<8x2048xf32>
    %c0_25 = arith.constant 0 : index
    %c0_26 = arith.constant 0 : index
    %c0_27 = arith.constant 0 : index
    %55 = vector.load %arg5[%c0_25, %c0_26, %c0_27] : memref<2x8x2048xf32, #tpu.memory_space<vmem>>, vector<1x8x2048xf32>
    %56 = vector.shape_cast %55 : vector<1x8x2048xf32> to vector<8x2048xf32>
    %57 = vector.shape_cast %54 : vector<8x2048xf32> to vector<1x8x2048xf32>
    tpu.vector_store %arg5[%c0_25, %c0_26, %c0_27], %57 {strides = array<i32>} : memref<2x8x2048xf32, #tpu.memory_space<vmem>>, vector<1x8x2048xf32>,
    %c1 = arith.constant 1 : index
    %c0_28 = arith.constant 0 : index
    %58 = vector.load %arg3[%c1, %c0_28] : memref<2x2048xf32, #tpu.memory_space<vmem>>, vector<1x2048xf32>
    %cst_29 = arith.constant 0.000000e+00 : f32
    %cst_30 = arith.constant 1.000000e+00 : f32
    %59 = vector.broadcast %cst_29 : f32 to vector<1x2048xf32>
    %60 = arith.maximumf %59, %58 : vector<1x2048xf32>
    %61 = vector.broadcast %cst_30 : f32 to vector<1x2048xf32>
    %62 = arith.minimumf %61, %60 : vector<1x2048xf32>
    %cst_31 = arith.constant 3.000000e+00 : f32
    %63 = vector.broadcast %cst_31 : f32 to vector<1x2048xf32>
    %64 = arith.mulf %62, %63 : vector<1x2048xf32>
    %cst_32 = arith.constant 0.000000e+00 : f32
    %65 = vector.broadcast %cst_32 : f32 to vector<1x2048xf32>
    %66 = arith.subf %64, %65 : vector<1x2048xf32>
    %67 = math.absf %66 : vector<1x2048xf32>
    %cst_33 = arith.constant 1.000000e+00 : f32
    %68 = vector.broadcast %cst_33 : f32 to vector<1x2048xf32>
    %69 = arith.subf %68, %67 : vector<1x2048xf32>
    %cst_34 = arith.constant 0.000000e+00 : f32
    %70 = vector.broadcast %cst_34 : f32 to vector<1x2048xf32>
    %71 = arith.maximumf %70, %69 : vector<1x2048xf32>
    %c0_35 = arith.constant 0 : index
    %c0_36 = arith.constant 0 : index
    %72 = vector.load %arg4[%c0_35, %c0_36] : memref<16x2048xf32, #tpu.memory_space<vmem>>, vector<4x2048xf32>
    %73 = vector.broadcast %71 : vector<1x2048xf32> to vector<4x2048xf32>
    %74 = arith.mulf %72, %73 : vector<4x2048xf32>
    %cst_37 = arith.constant 1.000000e+00 : f32
    %75 = vector.broadcast %cst_37 : f32 to vector<1x2048xf32>
    %76 = arith.subf %64, %75 : vector<1x2048xf32>
    %77 = math.absf %76 : vector<1x2048xf32>
    %cst_38 = arith.constant 1.000000e+00 : f32
    %78 = vector.broadcast %cst_38 : f32 to vector<1x2048xf32>
    %79 = arith.subf %78, %77 : vector<1x2048xf32>
    %cst_39 = arith.constant 0.000000e+00 : f32
    %80 = vector.broadcast %cst_39 : f32 to vector<1x2048xf32>
    %81 = arith.maximumf %80, %79 : vector<1x2048xf32>
    %c4_40 = arith.constant 4 : index
    %c0_41 = arith.constant 0 : index
    %82 = vector.load %arg4[%c4_40, %c0_41] : memref<16x2048xf32, #tpu.memory_space<vmem>>, vector<4x2048xf32>
    %83 = vector.broadcast %81 : vector<1x2048xf32> to vector<4x2048xf32>
    %84 = arith.mulf %82, %83 : vector<4x2048xf32>
    %85 = arith.addf %74, %84 : vector<4x2048xf32>
    %cst_42 = arith.constant 2.000000e+00 : f32
    %86 = vector.broadcast %cst_42 : f32 to vector<1x2048xf32>
    %87 = arith.subf %64, %86 : vector<1x2048xf32>
    %88 = math.absf %87 : vector<1x2048xf32>
    %cst_43 = arith.constant 1.000000e+00 : f32
    %89 = vector.broadcast %cst_43 : f32 to vector<1x2048xf32>
    %90 = arith.subf %89, %88 : vector<1x2048xf32>
    %cst_44 = arith.constant 0.000000e+00 : f32
    %91 = vector.broadcast %cst_44 : f32 to vector<1x2048xf32>
    %92 = arith.maximumf %91, %90 : vector<1x2048xf32>
    %c8_45 = arith.constant 8 : index
    %c0_46 = arith.constant 0 : index
    %93 = vector.load %arg4[%c8_45, %c0_46] : memref<16x2048xf32, #tpu.memory_space<vmem>>, vector<4x2048xf32>
    %94 = vector.broadcast %92 : vector<1x2048xf32> to vector<4x2048xf32>
    %95 = arith.mulf %93, %94 : vector<4x2048xf32>
    %96 = arith.addf %85, %95 : vector<4x2048xf32>
    %cst_47 = arith.constant 3.000000e+00 : f32
    %97 = vector.broadcast %cst_47 : f32 to vector<1x2048xf32>
    %98 = arith.subf %64, %97 : vector<1x2048xf32>
    %99 = math.absf %98 : vector<1x2048xf32>
    %cst_48 = arith.constant 1.000000e+00 : f32
    %100 = vector.broadcast %cst_48 : f32 to vector<1x2048xf32>
    %101 = arith.subf %100, %99 : vector<1x2048xf32>
    %cst_49 = arith.constant 0.000000e+00 : f32
    %102 = vector.broadcast %cst_49 : f32 to vector<1x2048xf32>
    %103 = arith.maximumf %102, %101 : vector<1x2048xf32>
    %c12_50 = arith.constant 12 : index
    %c0_51 = arith.constant 0 : index
    %104 = vector.load %arg4[%c12_50, %c0_51] : memref<16x2048xf32, #tpu.memory_space<vmem>>, vector<4x2048xf32>
    %105 = vector.broadcast %103 : vector<1x2048xf32> to vector<4x2048xf32>
    %106 = arith.mulf %104, %105 : vector<4x2048xf32>
    %107 = arith.addf %96, %106 : vector<4x2048xf32>
    %cst_52 = arith.constant dense<0.000000e+00> : vector<8x2048xf32>
    %108 = tpu.matmul %0, %107, %cst_52 {dimension_numbers = #tpu.dot_dimension_numbers<[1], [0], [0], [1], [0, 0, 1, 1], [], []>} : vector<8x4xf32>, vector<4x2048xf32>, vector<8x2048xf32> -> vector<8x2048xf32>
    %109 = vector.broadcast %1 : vector<8x1xf32> to vector<8x2048xf32>
    %110 = arith.addf %108, %109 : vector<8x2048xf32>
    %c1_53 = arith.constant 1 : index
    %c0_54 = arith.constant 0 : index
    %c0_55 = arith.constant 0 : index
    %111 = vector.load %arg5[%c1_53, %c0_54, %c0_55] : memref<2x8x2048xf32, #tpu.memory_space<vmem>>, vector<1x8x2048xf32>
    %112 = vector.shape_cast %111 : vector<1x8x2048xf32> to vector<8x2048xf32>
    %113 = vector.shape_cast %110 : vector<8x2048xf32> to vector<1x8x2048xf32>
    tpu.vector_store %arg5[%c1_53, %c0_54, %c0_55], %113 {strides = array<i32>} : memref<2x8x2048xf32, #tpu.memory_space<vmem>>, vector<1x8x2048xf32>,
    return
  }
  func.func @transform_0(%arg0: i32) -> (i32, i32) {
    %c0_i32 = arith.constant 0 : i32
    %c0_i32_0 = arith.constant 0 : i32
    %c0_i32_1 = arith.constant 0 : i32
    return %c0_i32, %c0_i32_0 : i32, i32
  }
  func.func @transform_1(%arg0: i32) -> (i32, i32) {
    %c0_i32 = arith.constant 0 : i32
    %c0_i32_0 = arith.constant 0 : i32
    %c0_i32_1 = arith.constant 0 : i32
    return %c0_i32, %c0_i32_0 : i32, i32
  }
  func.func @transform_2(%arg0: i32) -> (i32, i32) {
    %c0_i32 = arith.constant 0 : i32
    %c0_i32_0 = arith.constant 0 : i32
    return %c0_i32, %arg0 : i32, i32
  }
  func.func @transform_3(%arg0: i32) -> (i32, i32) {
    %c0_i32 = arith.constant 0 : i32
    %c0_i32_0 = arith.constant 0 : i32
    return %c0_i32, %arg0 : i32, i32
  }
  func.func @transform_4(%arg0: i32) -> (i32, i32, i32) {
    %c0_i32 = arith.constant 0 : i32
    %c0_i32_0 = arith.constant 0 : i32
    %c0_i32_1 = arith.constant 0 : i32
    return %c0_i32, %c0_i32_0, %arg0 : i32, i32, i32
  }
}

</mosaic_0001>

<bundles_post_ra>
// kernel: tpu_custom_call.1
= control target key start
LH: loop header
LB: loop body
LE: loop exit
PB: predicated region body
PF: predicated region fallthrough
CT: control target
= control target key end

     0   :  { %9 = vsyncpa [#allocation3], 0  ;;  %s4062_s0 = inlined_call_operand.vmem [shape: f32[8,4], index: 0, kind: input, shape index: {}]   ;;  %s4063_s1 = inlined_call_operand.vmem [shape: f32[8,1], index: 1, kind: input, shape index: {}]   ;;  %s4064_s2 = inlined_call_operand.hbm [shape: f32[2,4096], index: 2, kind: input, shape index: {}]   ;;  %s4065_s3 = inlined_call_operand.hbm [shape: f32[16,4096], index: 3, kind: input, shape index: {}]   ;;  %s4066_s4 = inlined_call_operand.hbm [shape: f32[2,8,4096], index: 4, kind: output, shape index: {}]  }
   0x1   :  { %11 = vsyncpa [#allocation3 + $0x1], 0 }
   0x2   :  { %12 = vsyncpa [#allocation6], 0 }
   0x3   :  { %14 = vsyncpa [#allocation6 + $0x1], 0 }
   0x4   :  { %15 = vsyncpa [#allocation4], 0 }
   0x5   :  { %17 = vsyncpa [#allocation4 + $0x1], 0  ;;  %s3246_s15 = smov 0   ;;  %s3248_s16 = smov 0  }
   0x6   :  { %s3250_s17 = smov 0   ;;  %s3252_s18 = smov 0  }
   0x7 LB: > { %s3267_s19 = sadd.s32 4294967295, %s3208_s18   ;;  %s2923_s20 = sadd.s32 4294967294, %s3208_s18   ;;  %s3208_s18 = sphi %s3252_s18, %s4082_s18   ;;  %s3204_s17 = sphi %s3250_s17, %s4081_s17   ;;  %s3200_s16 = sphi %s3248_s16, %s4080_s16   ;;  %s3196_s15 = sphi %s3246_s15, %s4079_s15  }
   0x8   : > { %s3271_s21 = sadd.s32 1, %s3208_s18   ;;  %s72_s22 = sadd.s32 1, %s3204_s17 }
   0x9   : > { %s69_s23 = ssub.s32 %s3208_s18, %s3271_s21  ;;  %p79_p0 = scmp.ne.s32.totalorder %s3204_s17, %s3200_s16 }
   0xa   : > { %p70_p1 = scmp.eq.s32.totalorder %s69_s23, 0  ;;  %p80_p2 = scmp.eq.s32.totalorder %s3208_s18, 0 }
   0xb   : > { %p85_p3 = scmp.ne.s32.totalorder %s3200_s16, %s3196_s15  ;;  %p86_p4 = scmp.eq.s32.totalorder %s3267_s19, 0 }
   0xc   : > { %s3283_s24 = scalar_select %p70_p1, %s3204_s17, %s72_s22  }
   0xd   : > { %p3285_p5 = por %p80_p2, %p79_p0  ;;  %p3289_p6 = por %p86_p4, %p85_p3 }
   0xe   : > { %p135_p7 = scmp.eq.s32.totalorder %s3267_s19, 1  ;;  %p141_p8 = scmp.eq.s32.totalorder %s2923_s20, 1 }
   0xf   : > { %s4070_s26 = scalar_select %p3289_p6, 1, 0 }
  0x10   : > { %p3040_p10 = scmp.lt.s32.totalorder %s3208_s18, 2  ;;  %p3296_p11 = por %p135_p7, %p79_p0 }
  0x11   : > { %p3300_p12 = por %p141_p8, %p85_p3  ;;  %s3305_s29 = sand.u32 1, %s3204_s17  }
  0x12   : > { %s4071_s27 = scalar_select %p3296_p11, 1, 0 }
  0x13   : > { %s4072_s28 = scalar_select %p3300_p12, 1, 0 }
  0x14   : > { %s3020_s30 = sshll.u32 %s3208_s18, 9  ;;  %s2926_s5 = sshll.u32 %s3305_s29, 5 }
  0x15   : > { %s3312_s8 = scalar_lea.hbm %s4064_s2, %s3020_s30  ;;  %s171_s9 = scalar_lea.vmem [#allocation2], %s2926_s5 }
  0x16   : > { %s179_s10 = sshll.u32 %s171_s9, 4  ;;  %p3316_p13 = pnand %p3040_p10, %p3285_p5  ;;  %s180_s10 = int_to_ptr.vmem [resolvable:$true] %s179_s10 }
  0x17   : > { %s2929_s12 = sshll.u32 %s3305_s29, 8  ;;  %s168_s13 = scalar_lea.sflag [#allocation3], %s3305_s29 }
  0x18   : > { %s3084_s14 = scalar_lea.hbm %s3312_s8, 512  ;;  %p3086_p1 = pneg %p3316_p13 }
  0x19   : > { %p3085_p0 = scmp.ne.s32.totalorder %s3312_s8, %s3084_s14  ;;  %s3089_s23 = scalar_lea.hbm %s4064_s2, 1024 }
  0x1a   : > { %p3090_p4 = scmp.lt.s32.totalorder %s3312_s8, %s4064_s2  ;;  %p3091_p5 = scmp.lt.s32.totalorder %s3089_s23, %s3084_s14 }
  0x1b   : > { %p3087_p2 = pnand %p3086_p1, %p3085_p0 }
  0x1c   : > { %p3092_p7 = por %p3091_p5, %p3090_p4 }
  0x1d   : > { %p3088_p3 = pneg %p3087_p2 }
  0x1f   : > { %p3093_p8 = pnand %p3092_p7, %p3088_p3 }
  0x21   : > { %3096 = shalt.err (!%p3093_p8)
}
  0x22   : > { %s3097_s5 = scalar_lea.vmem %s180_s10, 512  ;;  %s3210_s6 = smov [#allocation2]  }
  0x23   : > { %p3098_p10 = scmp.ne.s32.totalorder %s180_s10, %s3097_s5  ;;  %s3102_s7 = sshll.u32 %s3210_s6, 4  ;;  %s3103_s7 = int_to_ptr.vmem [resolvable:$false] %s3102_s7 }
  0x24   : > { %s3104_s9 = scalar_lea.vmem %s3103_s7, 1024  ;;  %p3105_p2 = scmp.lt.s32.totalorder %s180_s10, %s3103_s7 }
  0x25   : > { %p3100_p9 = pnand %p3098_p10, %p3086_p1  ;;  %p3106_p12 = scmp.lt.s32.totalorder %s3104_s9, %s3097_s5 }
  0x27   : > { %p3101_p0 = pneg %p3100_p9  ;;  %p3107_p11 = por %p3106_p12, %p3105_p2 }
  0x29   : > { %p3108_p6 = pnand %p3107_p11, %p3101_p0 }
  0x2b   : > { %3111 = shalt.err (!%p3108_p6)
}
  0x2c   : > { %3032 = dma.hbm_to_vmem [thread:$0]  (!%p3316_p13), %s3312_s8, 512, %s180_s10, %s168_s13  }
  0x2d   : > { %p2932_p9 = scmp.ge.s32.totalorder %s3208_s18, 1  ;;  %p205_p3 = scmp.lt.s32.totalorder %s3208_s18, 3 }
  0x2e   : > { %s3021_s14 = sshll.u32 %s3208_s18, 11  ;;  %s190_s25 = scalar_lea.vmem [#allocation5], %s2929_s12 }
  0x2f   : > { %s3348_s23 = scalar_lea.hbm %s4065_s3, %s3021_s14  ;;  %s197_s30 = sshll.u32 %s190_s25, 4  ;;  %s3356_s30 = int_to_ptr.vmem [resolvable:$true] %s197_s30 }
  0x30   : > { %p3352_p6 = pnand %p2932_p9, %p205_p3  ;;  %s187_s8 = scalar_lea.sflag [#allocation6], %s3305_s29 }
  0x31   : > { %s3112_s10 = scalar_lea.hbm %s3348_s23, 4096  ;;  %s3117_s7 = scalar_lea.hbm %s4065_s3, 8192 }
  0x32   : > { %p3113_p11 = scmp.ne.s32.totalorder %s3348_s23, %s3112_s10  ;;  %p3118_p5 = scmp.lt.s32.totalorder %s3348_s23, %s4065_s3 }
  0x33   : > { %p3119_p7 = scmp.lt.s32.totalorder %s3117_s7, %s3112_s10 }
  0x34   : > { %p3115_p12 = pnand %p3113_p11, %p3086_p1 }
  0x35   : > { %p3120_p8 = por %p3119_p7, %p3118_p5 }
  0x36   : > { %p3116_p4 = pneg %p3115_p12 }
  0x38   : > { %p3121_p10 = pnand %p3120_p8, %p3116_p4 }
  0x3a   : > { %3124 = shalt.err (!%p3121_p10)
}
  0x3b   : > { %s3125_s14 = scalar_lea.vmem %s3356_s30, 4096  ;;  %s3211_s20 = smov [#allocation5]  }
  0x3c   : > { %p3126_p0 = scmp.ne.s32.totalorder %s3356_s30, %s3125_s14  ;;  %s3130_s22 = sshll.u32 %s3211_s20, 4  ;;  %s3131_s22 = int_to_ptr.vmem [resolvable:$false] %s3130_s22 }
  0x3d   : > { %s3132_s25 = scalar_lea.vmem %s3131_s22, 8192  ;;  %p3133_p3 = scmp.lt.s32.totalorder %s3356_s30, %s3131_s22 }
  0x3e   : > { %p3128_p2 = pnand %p3126_p0, %p3086_p1  ;;  %p3134_p11 = scmp.lt.s32.totalorder %s3132_s25, %s3125_s14 }
  0x40   : > { %p3129_p9 = pneg %p3128_p2  ;;  %p3135_p12 = por %p3134_p11, %p3133_p3 }
  0x42   : > { %p3136_p5 = pnand %p3135_p12, %p3129_p9 }
  0x44   : > { %3139 = shalt.err (!%p3136_p5)
}
  0x45   : > { %s3212_s10 = smov 4096   ;;  %s3213_s13 = smov 2048  }
  0x46   : > { %s3214_s6 = smov 128   ;;  %209 = sbr.rel (%p3352_p6) target bundleno = 437 (0x1b5), region = 36 }
  0x47   : > { %3035 = dma.hbm_to_vmem [thread:$0]  (!%p3316_p13), %s3348_s23, 4096, %s3356_s30, %s187_s8, %s3212_s10, %s3213_s13, %s3214_s6  }
  0x48   : > { %s3386_s7 = sand.u32 (!%p3352_p6), 1, %s3200_s16   ;;  %p4075_p1 = scmp.ne.s32.totalorder (!%p3352_p6), %s4070_s26, 0 }
  0x49   : > { %s2933_s9 = sshll.u32 (!%p3352_p6), %s3386_s7, 5  ;;  %s212_s12 = scalar_lea.sflag (!%p3352_p6), [#allocation3], %s3386_s7 }
  0x4a   : > { %s3390_s14 = scalar_lea.vmem (!%p3352_p6), [#allocation2], %s2933_s9 }
  0x4b   : > { %3183 = dma.done.wait (%p4075_p1), %s212_s12, 512  }
  0x4c   : > { %3185 = vsyncadd (%p4075_p1), %s212_s12, 4294966784  ;;  %s2934_s29 = sshll.u32 %s3386_s7, 8  ;;  %s221_s11 = scalar_lea.sflag [#allocation6], %s3386_s7 }
  0x4d   : > { %s3400_s23 = scalar_lea.vmem [#allocation5], %s2934_s29 }
  0x4e   : > { %3187 = dma.done.wait (%p4075_p1), %s221_s11, 4096  }
  0x4f   : > { %3189 = vsyncadd (%p4075_p1), %s221_s11, 4294963200  ;;  %v3215_v0 = vmov 0.0   ;;  %v259_v1 = vld [vmem:[%s3390_s14] ss:$2 sm:$0xff]  ;;  %v292_v2 = vlaneseq  ;;  %v277_v27 = vld [vmem:[%s3400_s23 + $0x18] sm:$0xf] }
  0x50   : > { %1020 = vmatprep.mubr.f32.mxu0 %v3215_v0  ;;  %1091 = vmatprep.mubr.f32.mxu1 %v3215_v0  ;;  %v262_v3 = vmax.f32 %v259_v1, 0.0  ;;  %v275_v25 = vld [vmem:[%s3400_s23 + $0x8] sm:$0xf]  ;;  %v397_v31 = vld [vmem:[%s3400_s23 + $0x8] sm:$0xf0]  ;;  %vm907_vm0 = vcmask 1043456  }
  0x51   : > { %v293_v5 = vshrl.u32 %v292_v2, 7  ;;  %v583_v33 = vld [vmem:[%s3400_s23 + $0x88] sm:$0xf]  ;;  %v721_v36 = vld [vmem:[%s3400_s23 + $0x88] sm:$0xf0]  ;;  %vm903_vm1 = vcmask 31744  }
  0x52   : > { %v264_v4 = vmin.f32 %v262_v3, 1.0  ;;  %v274_v37 = vld [vmem:[%s3400_s23] sm:$0xf]  ;;  %v399_v45 = vld [vmem:[%s3400_s23 + $0x18] sm:$0xf0]  ;;  %s3947_s25 = scalar_lea.vmem [#allocation7], %s2934_s29 }
  0x53   : > { %v3409_v11 = vsub.s32 1, %v293_v5  ;;  %v3411_v12 = vsub.s32 3, %v293_v5  ;;  %v3413_v16 = vsub.s32 0, %v293_v5  ;;  %v3415_v18 = vsub.s32 2, %v293_v5  ;;  %v585_v46 = vld [vmem:[%s3400_s23 + $0x98] sm:$0xf] }
  0x54   : > { %v266_v6 = vmul.f32 3.0, %v264_v4  ;;  %v3417_v19 = vsub.s32 5, %v293_v5  ;;  %v3419_v20 = vsub.s32 7, %v293_v5  ;;  %v3423_v24 = vsub.s32 4, %v293_v5  ;;  %v723_v47 = vld [vmem:[%s3400_s23 + $0x98] sm:$0xf0] }
  0x55   : > { %v3427_v28 = vsub.s32 6, %v293_v5  ;;  %v396_v52 = vld [vmem:[%s3400_s23] sm:$0xf0]  ;;  %v276_v57 = vld [vmem:[%s3400_s23 + $0x10] sm:$0xf]  ;;  %s3022_s10 = sshll.u32 %s3267_s19, 11 }
  0x56   : > { %v268_v7 = vand.u32 2147483647, %v266_v6  ;;  %v2937_v8 = vadd.f32 -1.0, %v266_v6  ;;  %v2939_v9 = vadd.f32 -2.0, %v266_v6  ;;  %v2941_v10 = vadd.f32 -3.0, %v266_v6  ;;  %s2827_s13 = sshll.u32 %s3947_s25, 4  ;;  %s4013_s12 = scalar_lea.hbm %s4066_s4, %s3022_s10  ;;  %s4016_s13 = int_to_ptr.vmem [resolvable:$true] %s2827_s13 }
  0x57   : > { %v582_v62 = vld [vmem:[%s3400_s23 + $0x80] sm:$0xf]  ;;  %v720_v63 = vld [vmem:[%s3400_s23 + $0x80] sm:$0xf0]  ;;  %v398_v5 = vld [vmem:[%s3400_s23 + $0x10] sm:$0xf0] }
  0x58   : > { %v270_v13 = vsub.f32 1.0, %v268_v7  ;;  %v390_v14 = vand.u32 2147483647, %v2937_v8  ;;  %v576_v15 = vand.u32 2147483647, %v2939_v9  ;;  %s2814_s19 = scalar_lea.sflag [#allocation4], %s3386_s7 }
  0x59   : > { %v714_v17 = vand.u32 2147483647, %v2941_v10  ;;  %v279_v10 = vld [vmem:[%s3400_s23 + $0x28] sm:$0xf]  ;;  %p4076_p6 = scmp.ne.s32.totalorder %s4071_s27, 0  ;;  %s3217_s29 = smov [#allocation7]  }
  0x5a   : > { %v3421_v21 = vmax.f32 %v270_v13, 0.0  ;;  %v392_v22 = vsub.f32 1.0, %v390_v14  ;;  %v578_v23 = vsub.f32 1.0, %v576_v15  ;;  %s3144_s11 = sshll.u32 %s3217_s29, 4  ;;  %s3145_s11 = int_to_ptr.vmem [resolvable:$false] %s3144_s11 }
  0x5b   : > { %v716_v26 = vsub.f32 1.0, %v714_v17  ;;  %p3147_p8 = scmp.lt.s32.totalorder %s4016_s13, %s3145_s11 }
  0x5c   : > { %v299_v29 = vrot.slane %v3421_v21, %v3409_v11  ;;  %v3431_v30 = vmax.f32 %v392_v22, 0.0  ;;  %v3434_v32 = vmax.f32 %v578_v23, 0.0  ;;  %v307_v34 = vrot.slane %v3421_v21, %v3411_v12  ;;  %v584_v22 = vld [vmem:[%s3400_s23 + $0x90] sm:$0xf]  ;;  %v722_v23 = vld [vmem:[%s3400_s23 + $0x90] sm:$0xf0] }
  0x5d   : > { %v3439_v35 = vmax.f32 %v716_v26, 0.0  ;;  %v295_v38 = vrot.slane %v3421_v21, %v3413_v16  ;;  %v303_v39 = vrot.slane %v3421_v21, %v3415_v18  ;;  %v315_v40 = vrot.slane %v3421_v21, %v3417_v19 }
  0x5e   : > { %v373_v41 = vmul.f32 %v299_v29, %v275_v25  ;;  %v421_v42 = vrot.slane %v3431_v30, %v3409_v11  ;;  %v607_v43 = vrot.slane %v3434_v32, %v3409_v11  ;;  %v375_v44 = vmul.f32 %v307_v34, %v277_v27 }
  0x5f   : > { %v745_v48 = vrot.slane %v3439_v35, %v3409_v11  ;;  %v429_v49 = vrot.slane %v3431_v30, %v3411_v12  ;;  %v615_v50 = vrot.slane %v3434_v32, %v3411_v12  ;;  %v753_v51 = vrot.slane %v3439_v35, %v3411_v12 }
  0x60   : > { %v495_v53 = vmul.f32 %v421_v42, %v397_v31  ;;  %v681_v54 = vmul.f32 %v607_v43, %v583_v33  ;;  %v372_v55 = vmul.f32 %v295_v38, %v274_v37  ;;  %v417_v56 = vrot.slane %v3431_v30, %v3413_v16  ;;  %v401_v42 = vld [vmem:[%s3400_s23 + $0x28] sm:$0xf0]  ;;  %v587_v43 = vld [vmem:[%s3400_s23 + $0xa8] sm:$0xf] }
  0x61   : > { %v819_v58 = vmul.f32 %v745_v48, %v721_v36  ;;  %v497_v59 = vmul.f32 %v429_v49, %v399_v45  ;;  %v683_v60 = vmul.f32 %v615_v50, %v585_v46  ;;  %v821_v61 = vmul.f32 %v753_v51, %v723_v47  ;;  %v725_v48 = vld [vmem:[%s3400_s23 + $0xa8] sm:$0xf0] }
  0x62   : > { %v527_v1 = vrot.slane %v495_v53, 4  ;;  %v494_v2 = vmul.f32 %v417_v56, %v396_v52  ;;  %v603_v3 = vrot.slane %v3434_v32, %v3413_v16  ;;  %v741_v4 = vrot.slane %v3439_v35, %v3413_v16  ;;  %v281_v52 = vld [vmem:[%s3400_s23 + $0x38] sm:$0xf] }
  0x63   : > { %v851_v6 = vrot.slane %v819_v58, 4  ;;  %v529_v7 = vrot.slane %v497_v59, 4  ;;  %v853_v8 = vrot.slane %v821_v61, 4  ;;  %v374_v9 = vmul.f32 %v303_v39, %v276_v57  ;;  %v403_v58 = vld [vmem:[%s3400_s23 + $0x38] sm:$0xf0] }
  0x64   : > { %v559_v13 = vadd.f32 %v527_v1, %v373_v41  ;;  %v526_v14 = vrot.slane %v494_v2, 4  ;;  %v680_v15 = vmul.f32 %v603_v3, %v582_v62  ;;  %v818_v17 = vmul.f32 %v741_v4, %v720_v63  ;;  %v589_v59 = vld [vmem:[%s3400_s23 + $0xb8] sm:$0xf]  ;;  %v727_v1 = vld [vmem:[%s3400_s23 + $0xb8] sm:$0xf0] }
  0x65   : > { %v561_v25 = vadd.f32 %v529_v7, %v375_v44  ;;  %v425_v26 = vrot.slane %v3431_v30, %v3415_v18  ;;  %v611_v27 = vrot.slane %v3434_v32, %v3415_v18  ;;  %v749_v29 = vrot.slane %v3439_v35, %v3415_v18  ;;  %v278_v2 = vld [vmem:[%s3400_s23 + $0x20] sm:$0xf] }
  0x66   : > { %v697_v31 = vadd.f32 %v681_v54, %v559_v13  ;;  %v558_v33 = vadd.f32 %v526_v14, %v372_v55  ;;  %v850_v34 = vrot.slane %v818_v17, 4  ;;  %v377_v36 = vmul.f32 %v315_v40, %v279_v10  ;;  %v3498_v54 = vld [vmem:[%s4062_s0] sm:$0xff] }
  0x67   : > { %v699_v37 = vadd.f32 %v683_v60, %v561_v25  ;;  %v496_v38 = vmul.f32 %v425_v26, %v398_v5  ;;  %v682_v39 = vmul.f32 %v611_v27, %v584_v22  ;;  %v820_v41 = vmul.f32 %v749_v29, %v722_v23  ;;  %v400_v13 = vld [vmem:[%s3400_s23 + $0x20] sm:$0xf0]  ;;  %v586_v23 = vld [vmem:[%s3400_s23 + $0xa0] sm:$0xf] }
  0x68   : > { %v883_v44 = vadd.f32 %v851_v6, %v697_v31  ;;  %v696_v45 = vadd.f32 %v680_v15, %v558_v33  ;;  %v437_v46 = vrot.slane %v3431_v30, %v3417_v19  ;;  %v623_v47 = vrot.slane %v3434_v32, %v3417_v19  ;;  %v724_v25 = vld [vmem:[%s3400_s23 + $0xa0] sm:$0xf0]  ;;  %v280_v33 = vld [vmem:[%s3400_s23 + $0x30] sm:$0xf] }
  0x69   : > { %v885_v49 = vadd.f32 %v853_v8, %v699_v37  ;;  %v528_v40 = vrot.slane %v496_v38, 4  ;;  %v852_v50 = vrot.slane %v820_v41, 4  ;;  %v761_v51 = vrot.slane %v3439_v35, %v3417_v19 }
  0x6a   : > { %2943 = vmatprep.subr.msk.mxu0 %vm907_vm0, %v883_v44  ;;  %v882_v53 = vadd.f32 %v850_v34, %v696_v45  ;;  %v499_v55 = vmul.f32 %v437_v46, %v401_v42  ;;  %v685_v56 = vmul.f32 %v623_v47, %v587_v43  ;;  %v323_v57 = vrot.slane %v3421_v21, %v3419_v20  ;;  %v588_v45 = vld [vmem:[%s3400_s23 + $0xb0] sm:$0xf]  ;;  %v2967_v47 = vld [vmem:[%s3390_s14 + $0x1] ss:$2 sm:$0xff] }
  0x6b   : > { %2946 = vmatprep.subr.msk.mxu1 %vm907_vm0, %v885_v49  ;;  %v560_v60 = vadd.f32 %v528_v40, %v374_v9  ;;  %v823_v61 = vmul.f32 %v761_v51, %v725_v48  ;;  %v445_v62 = vrot.slane %v3431_v30, %v3419_v20  ;;  %v631_v63 = vrot.slane %v3434_v32, %v3419_v20  ;;  %v2936_v46 = vld [vmem:[%s3390_s14 + $0x10] ss:$2 sm:$0xff] }
  0x6c   : > { %2944 = vmatpush1.msk.msra.mxu0 %vm907_vm0, %v882_v53  ;;  %v531_v3 = vrot.slane %v499_v55, 4  ;;  %v379_v4 = vmul.f32 %v323_v57, %v281_v52  ;;  %v769_v5 = vrot.slane %v3439_v35, %v3419_v20  ;;  %v311_v6 = vrot.slane %v3421_v21, %v3423_v24 }
  0x6d   : > { %v698_v7 = vadd.f32 %v682_v39, %v560_v60  ;;  %2945 = vmatmul.mubr.msk.f32.vlgmr.msra.gmra.mxu0 %vm903_vm1, %v3498_v54  ;;  %v855_v8 = vrot.slane %v823_v61, 4  ;;  %v501_v9 = vmul.f32 %v445_v62, %v403_v58  ;;  %v687_v10 = vmul.f32 %v631_v63, %v589_v59  ;;  %v402_v39 = vld [vmem:[%s3400_s23 + $0x30] sm:$0xf0]  ;;  %v258_v59 = vld [vmem:[%s4063_s1] sm:$0xff] }
  0x6e   : > { %v563_v14 = vadd.f32 %v531_v3, %v377_v36  ;;  %v825_v15 = vmul.f32 %v769_v5, %v727_v1  ;;  %v376_v17 = vmul.f32 %v311_v6, %v278_v2  ;;  %v433_v22 = vrot.slane %v3431_v30, %v3423_v24  ;;  %1162 = vmatprep.mubr.f32.mxu0 %v3215_v0 }
  0x6f   : > { %v884_v26 = vadd.f32 %v852_v50, %v698_v7  ;;  %v533_v27 = vrot.slane %v501_v9, 4  ;;  %v619_v29 = vrot.slane %v3434_v32, %v3423_v24  ;;  %v757_v31 = vrot.slane %v3439_v35, %v3423_v24  ;;  %v726_v50 = vld [vmem:[%s3400_s23 + $0xb0] sm:$0xf0] }
  0x70   : > { %v701_v34 = vadd.f32 %v685_v56, %v563_v14  ;;  %v857_v36 = vrot.slane %v825_v15, 4  ;;  %v498_v37 = vmul.f32 %v433_v22, %v400_v13  ;;  %v319_v38 = vrot.slane %v3421_v21, %v3427_v28 }
  0x71   : > { %2947 = vmatpush1.msk.msra.mxu1 %vm907_vm0, %v884_v26  ;;  %v565_v41 = vadd.f32 %v533_v27, %v379_v4  ;;  %v684_v42 = vmul.f32 %v619_v29, %v586_v23  ;;  %v822_v43 = vmul.f32 %v757_v31, %v724_v25  ;;  %v441_v44 = vrot.slane %v3431_v30, %v3427_v28  ;;  %v283_v29 = vld [vmem:[%s3400_s23 + $0x48] sm:$0xf] }
  0x72   : > { %2948 = vmatmul.mubr.msk.f32.vlgmr.msra.gmra.mxu1 %vm903_vm1, %v3498_v54  ;;  %v887_v48 = vadd.f32 %v855_v8, %v701_v34  ;;  %v530_v49 = vrot.slane %v498_v37, 4  ;;  %v378_v40 = vmul.f32 %v319_v38, %v280_v33  ;;  %v627_v21 = vrot.slane %v3434_v32, %v3427_v28  ;;  %v285_v33 = vld [vmem:[%s3400_s23 + $0x58] sm:$0xf] }
  0x73   : > { %v703_v51 = vadd.f32 %v687_v10, %v565_v41  ;;  %v854_v52 = vrot.slane %v822_v43, 4  ;;  %v500_v53 = vmul.f32 %v441_v44, %v402_v39  ;;  %v765_v55 = vrot.slane %v3439_v35, %v3427_v28  ;;  %1233 = vmatprep.mubr.f32.mxu1 %v3215_v0 }
  0x74   : > { %2949 = vmatprep.subr.msk.mxu0 %vm907_vm0, %v887_v48  ;;  %v562_v30 = vadd.f32 %v530_v49, %v376_v17  ;;  %v686_v56 = vmul.f32 %v627_v21, %v588_v45  ;;  %v263_v57 = vmax.f32 %v2936_v46, 0.0  ;;  %v1544_v58 = vmax.f32 %v2967_v47, 0.0  ;;  %v405_v48 = vld [vmem:[%s3400_s23 + $0x48] sm:$0xf0] }
  0x75   : > { %v889_v32 = vadd.f32 %v857_v36, %v703_v51  ;;  %v532_v60 = vrot.slane %v500_v53, 4  ;;  %v824_v61 = vmul.f32 %v765_v55, %v726_v50  ;;  %v3216_v2 = vmov 0   ;;  %v729_v51 = vld [vmem:[%s3400_s23 + $0xc8] sm:$0xf0] }
  0x76   : > { %v700_v62 = vadd.f32 %v684_v42, %v562_v30  ;;  %v265_v63 = vmin.f32 %v263_v57, 1.0  ;;  %v1546_v1 = vmin.f32 %v1544_v58, 1.0  ;;  %3082 = vset.pattern.permute.xlu0 %v3216_v2 }
  0x77   : > { %2952 = vmatprep.subr.msk.mxu1 %vm907_vm0, %v889_v32  ;;  %v564_v35 = vadd.f32 %v532_v60, %v378_v40  ;;  %v856_v3 = vrot.slane %v824_v61, 4  ;;  %900 = vperm.xlu0 %3082, %v258_v59   ;;  %v591_v40 = vld [vmem:[%s3400_s23 + $0xc8] sm:$0xf]  ;;  %v407_v32 = vld [vmem:[%s3400_s23 + $0x58] sm:$0xf0] }
  0x78   : > { %v886_v4 = vadd.f32 %v854_v52, %v700_v62  ;;  %v267_v5 = vmul.f32 3.0, %v265_v63  ;;  %v1548_v6 = vmul.f32 3.0, %v1546_v1  ;;  %v282_v52 = vld [vmem:[%s3400_s23 + $0x40] sm:$0xf]  ;;  %v593_v60 = vld [vmem:[%s3400_s23 + $0xd8] sm:$0xf] }
  0x79   : > { %v702_v7 = vadd.f32 %v686_v56, %v564_v35  ;;  %v731_v61 = vld [vmem:[%s3400_s23 + $0xd8] sm:$0xf0]  ;;  %v404_v35 = vld [vmem:[%s3400_s23 + $0x40] sm:$0xf0] }
  0x7a   : > { %2950 = vmatpush1.msk.msra.mxu0 %vm907_vm0, %v886_v4  ;;  %v269_v8 = vand.u32 2147483647, %v267_v5  ;;  %v2938_v9 = vadd.f32 -1.0, %v267_v5  ;;  %v2940_v10 = vadd.f32 -2.0, %v267_v5  ;;  %v2942_v13 = vadd.f32 -3.0, %v267_v5 }
  0x7b   : > { %v888_v14 = vadd.f32 %v856_v3, %v702_v7  ;;  %2951 = vmatmul.mubr.msk.f32.vlgmr.msra.gmra.mxu0 %vm903_vm1, %v3498_v54  ;;  %v1550_v15 = vand.u32 2147483647, %v1548_v6  ;;  %v2969_v17 = vadd.f32 -1.0, %v1548_v6  ;;  %v3554_v22 = vadd.f32 -2.0, %v1548_v6  ;;  %v284_v7 = vld [vmem:[%s3400_s23 + $0x50] sm:$0xf] }
  0x7c   : > { %v271_v23 = vsub.f32 1.0, %v269_v8  ;;  %v391_v25 = vand.u32 2147483647, %v2938_v9  ;;  %v577_v26 = vand.u32 2147483647, %v2940_v10  ;;  %1304 = vmatprep.mubr.f32.mxu0 %v3215_v0  ;;  %v3557_v27 = vadd.f32 -3.0, %v1548_v6 }
  0x7d   : > { %2953 = vmatpush1.msk.msra.mxu1 %vm907_vm0, %v888_v14  ;;  %v715_v31 = vand.u32 2147483647, %v2942_v13  ;;  %v1552_v34 = vsub.f32 1.0, %v1550_v15  ;;  %v1672_v36 = vand.u32 2147483647, %v2969_v17 }
  0x7e   : > { %2954 = vmatmul.mubr.msk.f32.vlgmr.msra.gmra.mxu1 %vm903_vm1, %v3498_v54  ;;  %v3564_v37 = vmax.f32 %v271_v23, 0.0  ;;  %v393_v38 = vsub.f32 1.0, %v391_v25  ;;  %v579_v39 = vsub.f32 1.0, %v577_v26  ;;  %v1858_v41 = vand.u32 2147483647, %v3554_v22 }
  0x7f   : > { %v717_v42 = vsub.f32 1.0, %v715_v31  ;;  %1375 = vmatprep.mubr.f32.mxu1 %v3215_v0  ;;  %v3568_v43 = vmax.f32 %v1552_v34, 0.0  ;;  %v3570_v44 = vsub.f32 1.0, %v1672_v36  ;;  %v1996_v45 = vand.u32 2147483647, %v3557_v27 }
  0x80   : > { %v331_v46 = vrot.slane %v3564_v37, %v3409_v11  ;;  %v3575_v47 = vmax.f32 %v393_v38, 0.0  ;;  %v3578_v49 = vmax.f32 %v579_v39, 0.0  ;;  %v339_v21 = vrot.slane %v3564_v37, %v3411_v12  ;;  %v590_v14 = vld [vmem:[%s3400_s23 + $0xc0] sm:$0xf]  ;;  %v728_v15 = vld [vmem:[%s3400_s23 + $0xc0] sm:$0xf0] }
  0x81   : > { %v3583_v50 = vmax.f32 %v717_v42, 0.0  ;;  %v327_v53 = vrot.slane %v3564_v37, %v3413_v16  ;;  %v335_v55 = vrot.slane %v3564_v37, %v3415_v18  ;;  %v347_v30 = vrot.slane %v3564_v37, %v3417_v19  ;;  %v287_v38 = vld [vmem:[%s3400_s23 + $0x68] sm:$0xf] }
  0x82   : > { %v381_v56 = vmul.f32 %v331_v46, %v283_v29  ;;  %v453_v57 = vrot.slane %v3575_v47, %v3409_v11  ;;  %v639_v58 = vrot.slane %v3578_v49, %v3409_v11  ;;  %v383_v59 = vmul.f32 %v339_v21, %v285_v33  ;;  %v406_v29 = vld [vmem:[%s3400_s23 + $0x50] sm:$0xf0] }
  0x83   : > { %v777_v62 = vrot.slane %v3583_v50, %v3409_v11  ;;  %v461_v63 = vrot.slane %v3575_v47, %v3411_v12  ;;  %v647_v1 = vrot.slane %v3578_v49, %v3411_v12  ;;  %v785_v2 = vrot.slane %v3583_v50, %v3411_v12  ;;  %v730_v21 = vld [vmem:[%s3400_s23 + $0xd0] sm:$0xf0] }
  0x84   : > { %v503_v3 = vmul.f32 %v453_v57, %v405_v48  ;;  %v689_v4 = vmul.f32 %v639_v58, %v591_v40  ;;  %v380_v5 = vmul.f32 %v327_v53, %v282_v52  ;;  %v449_v6 = vrot.slane %v3575_v47, %v3413_v16  ;;  %v592_v40 = vld [vmem:[%s3400_s23 + $0xd0] sm:$0xf] }
  0x85   : > { %v827_v8 = vmul.f32 %v777_v62, %v729_v51  ;;  %v505_v9 = vmul.f32 %v461_v63, %v407_v32  ;;  %v691_v10 = vmul.f32 %v647_v1, %v593_v60  ;;  %v829_v13 = vmul.f32 %v785_v2, %v731_v61  ;;  %v595_v1 = vld [vmem:[%s3400_s23 + $0xe8] sm:$0xf] }
  0x86   : > { %v535_v17 = vrot.slane %v503_v3, 4  ;;  %v502_v23 = vmul.f32 %v449_v6, %v404_v35  ;;  %v635_v25 = vrot.slane %v3578_v49, %v3413_v16  ;;  %v773_v26 = vrot.slane %v3583_v50, %v3413_v16 }
  0x87   : > { %v859_v31 = vrot.slane %v827_v8, 4  ;;  %v537_v33 = vrot.slane %v505_v9, 4  ;;  %v861_v34 = vrot.slane %v829_v13, 4  ;;  %v382_v36 = vmul.f32 %v335_v55, %v284_v7  ;;  %v289_v9 = vld [vmem:[%s3400_s23 + $0x78] sm:$0xf] }
  0x88   : > { %v567_v39 = vadd.f32 %v535_v17, %v381_v56  ;;  %v534_v42 = vrot.slane %v502_v23, 4  ;;  %v688_v46 = vmul.f32 %v635_v25, %v590_v14  ;;  %v826_v48 = vmul.f32 %v773_v26, %v728_v15  ;;  %v411_v17 = vld [vmem:[%s3400_s23 + $0x78] sm:$0xf0]  ;;  %v597_v23 = vld [vmem:[%s3400_s23 + $0xf8] sm:$0xf] }
  0x89   : > { %v569_v51 = vadd.f32 %v537_v33, %v383_v59  ;;  %v457_v52 = vrot.slane %v3575_v47, %v3415_v18  ;;  %v643_v53 = vrot.slane %v3578_v49, %v3415_v18  ;;  %v781_v55 = vrot.slane %v3583_v50, %v3415_v18  ;;  %v409_v59 = vld [vmem:[%s3400_s23 + $0x68] sm:$0xf0]  ;;  %v735_v33 = vld [vmem:[%s3400_s23 + $0xf8] sm:$0xf0] }
  0x8a   : > { %v705_v57 = vadd.f32 %v689_v4, %v567_v39  ;;  %v566_v56 = vadd.f32 %v534_v42, %v380_v5  ;;  %v858_v58 = vrot.slane %v826_v48, 4  ;;  %v385_v32 = vmul.f32 %v347_v30, %v287_v38  ;;  %v733_v5 = vld [vmem:[%s3400_s23 + $0xe8] sm:$0xf0] }
  0x8b   : > { %v707_v60 = vadd.f32 %v691_v10, %v569_v51  ;;  %v504_v61 = vmul.f32 %v457_v52, %v406_v29  ;;  %v690_v62 = vmul.f32 %v643_v53, %v592_v40  ;;  %v828_v63 = vmul.f32 %v781_v55, %v730_v21  ;;  %v408_v51 = vld [vmem:[%s3400_s23 + $0x60] sm:$0xf0] }
  0x8c   : > { %v891_v2 = vadd.f32 %v859_v31, %v705_v57  ;;  %v704_v35 = vadd.f32 %v688_v46, %v566_v56  ;;  %v469_v3 = vrot.slane %v3575_v47, %v3417_v19  ;;  %v655_v4 = vrot.slane %v3578_v49, %v3417_v19  ;;  %v594_v56 = vld [vmem:[%s3400_s23 + $0xe0] sm:$0xf] }
  0x8d   : > { %v893_v6 = vadd.f32 %v861_v34, %v707_v60  ;;  %v536_v30 = vrot.slane %v504_v61, 4  ;;  %v860_v7 = vrot.slane %v828_v63, 4  ;;  %v793_v8 = vrot.slane %v3583_v50, %v3417_v19  ;;  %v286_v34 = vld [vmem:[%s3400_s23 + $0x60] sm:$0xf] }
  0x8e   : > { %2955 = vmatprep.subr.msk.mxu0 %vm907_vm0, %v891_v2  ;;  %v890_v10 = vadd.f32 %v858_v58, %v704_v35  ;;  %v507_v13 = vmul.f32 %v469_v3, %v409_v59  ;;  %v693_v14 = vmul.f32 %v655_v4, %v595_v1  ;;  %v355_v15 = vrot.slane %v3564_v37, %v3419_v20  ;;  %v732_v58 = vld [vmem:[%s3400_s23 + $0xe0] sm:$0xf0]  ;;  %v410_v3 = vld [vmem:[%s3400_s23 + $0x70] sm:$0xf0] }
  0x8f   : > { %2958 = vmatprep.subr.msk.mxu1 %vm907_vm0, %v893_v6  ;;  %v568_v25 = vadd.f32 %v536_v30, %v382_v36  ;;  %v831_v26 = vmul.f32 %v793_v8, %v733_v5  ;;  %v477_v29 = vrot.slane %v3575_v47, %v3419_v20  ;;  %v663_v31 = vrot.slane %v3578_v49, %v3419_v20 }
  0x90   : > { %2956 = vmatpush1.msk.msra.mxu0 %vm907_vm0, %v890_v10  ;;  %v539_v38 = vrot.slane %v507_v13, 4  ;;  %v387_v39 = vmul.f32 %v355_v15, %v289_v9  ;;  %v801_v42 = vrot.slane %v3583_v50, %v3419_v20  ;;  %v343_v36 = vrot.slane %v3564_v37, %v3423_v24  ;;  %v734_v13 = vld [vmem:[%s3400_s23 + $0xf0] sm:$0xf0] }
  0x91   : > { %v706_v46 = vadd.f32 %v690_v62, %v568_v25  ;;  %2957 = vmatmul.mubr.msk.f32.vlgmr.msra.gmra.mxu0 %vm903_vm1, %v3498_v54  ;;  %v863_v48 = vrot.slane %v831_v26, 4  ;;  %v509_v40 = vmul.f32 %v477_v29, %v411_v17  ;;  %v695_v21 = vmul.f32 %v663_v31, %v597_v23 }
  0x92   : > { %v571_v52 = vadd.f32 %v539_v38, %v385_v32  ;;  %v833_v53 = vmul.f32 %v801_v42, %v735_v33  ;;  %v384_v55 = vmul.f32 %v343_v36, %v286_v34  ;;  %v465_v57 = vrot.slane %v3575_v47, %v3423_v24  ;;  %1446 = vmatprep.mubr.f32.mxu0 %v3215_v0  ;;  %v288_v32 = vld [vmem:[%s3400_s23 + $0x70] sm:$0xf] }
  0x93   : > { %v892_v60 = vadd.f32 %v860_v7, %v706_v46  ;;  %v541_v61 = vrot.slane %v509_v40, 4  ;;  %v651_v62 = vrot.slane %v3578_v49, %v3423_v24  ;;  %v789_v63 = vrot.slane %v3583_v50, %v3423_v24  ;;  %v596_v7 = vld [vmem:[%s3400_s23 + $0xf0] sm:$0xf] }
  0x94   : > { %v709_v59 = vadd.f32 %v693_v14, %v571_v52  ;;  %v865_v1 = vrot.slane %v833_v53, 4  ;;  %v506_v2 = vmul.f32 %v465_v57, %v408_v51  ;;  %v351_v35 = vrot.slane %v3564_v37, %v3427_v28  ;;  %v1865_v53 = vld [vmem:[%s3400_s23 + $0x88] sm:$0xf] }
  0x95   : > { %2959 = vmatpush1.msk.msra.mxu1 %vm907_vm0, %v892_v60  ;;  %v573_v4 = vadd.f32 %v541_v61, %v387_v39  ;;  %v692_v5 = vmul.f32 %v651_v62, %v594_v56  ;;  %v830_v6 = vmul.f32 %v789_v63, %v732_v58  ;;  %v473_v30 = vrot.slane %v3575_v47, %v3427_v28  ;;  %v1557_v47 = vld [vmem:[%s3400_s23 + $0x8] sm:$0xf]  ;;  %v2003_v58 = vld [vmem:[%s3400_s23 + $0x88] sm:$0xf0]  ;;  %v2005_v62 = vld [vmem:[%s3400_s23 + $0x98] sm:$0xf0] }
  0x96   : > { %2960 = vmatmul.mubr.msk.f32.vlgmr.msra.gmra.mxu1 %vm903_vm1, %v3498_v54  ;;  %v895_v8 = vadd.f32 %v863_v48, %v709_v59  ;;  %v538_v9 = vrot.slane %v506_v2, 4  ;;  %v386_v10 = vmul.f32 %v351_v35, %v288_v32  ;;  %v659_v37 = vrot.slane %v3578_v49, %v3427_v28  ;;  %v1556_v2 = vld [vmem:[%s3400_s23] sm:$0xf] }
  0x97   : > { %v711_v14 = vadd.f32 %v695_v21, %v573_v4  ;;  %v862_v15 = vrot.slane %v830_v6, 4  ;;  %v508_v17 = vmul.f32 %v473_v30, %v410_v3  ;;  %v797_v23 = vrot.slane %v3583_v50, %v3427_v28  ;;  %1517 = vmatprep.mubr.f32.mxu1 %v3215_v0  ;;  %v1679_v50 = vld [vmem:[%s3400_s23 + $0x8] sm:$0xf0]  ;;  %v1678_v6 = vld [vmem:[%s3400_s23] sm:$0xf0] }
  0x98   : > { %2961 = vmatprep.subr.msk.mxu0 %vm907_vm0, %v895_v8  ;;  %v570_v25 = vadd.f32 %v538_v9, %v384_v55  ;;  %v694_v26 = vmul.f32 %v659_v37, %v596_v7  ;;  %v1581_v29 = vrot.slane %v3568_v43, %v3409_v11  ;;  %v3688_v49 = vmax.f32 %v3570_v44, 0.0  ;;  %v1559_v44 = vld [vmem:[%s3400_s23 + $0x18] sm:$0xf]  ;;  %v2002_v37 = vld [vmem:[%s3400_s23 + $0x80] sm:$0xf0] }
  0x99   : > { %v897_v31 = vadd.f32 %v865_v1, %v711_v14  ;;  %v540_v33 = vrot.slane %v508_v17, 4  ;;  %v832_v34 = vmul.f32 %v797_v23, %v734_v13  ;;  %v1860_v38 = vsub.f32 1.0, %v1858_v41  ;;  %v1681_v41 = vld [vmem:[%s3400_s23 + $0x18] sm:$0xf0] }
  0x9a   : > { %v708_v39 = vadd.f32 %v692_v5, %v570_v25  ;;  %v1655_v42 = vmul.f32 %v1581_v29, %v1557_v47  ;;  %v1703_v36 = vrot.slane %v3688_v49, %v3409_v11  ;;  %v1998_v46 = vsub.f32 1.0, %v1996_v45  ;;  %v1867_v45 = vld [vmem:[%s3400_s23 + $0x98] sm:$0xf]  ;;  %v1558_v29 = vld [vmem:[%s3400_s23 + $0x10] sm:$0xf] }
  0x9b   : > { %2964 = vmatprep.subr.msk.mxu1 %vm907_vm0, %v897_v31  ;;  %v572_v48 = vadd.f32 %v540_v33, %v386_v10  ;;  %v864_v40 = vrot.slane %v832_v34, 4  ;;  %v3699_v21 = vmax.f32 %v1860_v38, 0.0  ;;  %v1589_v22 = vrot.slane %v3568_v43, %v3411_v12  ;;  %v1864_v10 = vld [vmem:[%s3400_s23 + $0x80] sm:$0xf]  ;;  %v1680_v38 = vld [vmem:[%s3400_s23 + $0x10] sm:$0xf0] }
  0x9c   : > { %v894_v51 = vadd.f32 %v862_v15, %v708_v39  ;;  %v1777_v52 = vmul.f32 %v1703_v36, %v1679_v50  ;;  %v3705_v55 = vmax.f32 %v1998_v46, 0.0  ;;  %v1711_v27 = vrot.slane %v3688_v49, %v3411_v12  ;;  %v1866_v39 = vld [vmem:[%s3400_s23 + $0x90] sm:$0xf] }
  0x9d   : > { %v710_v57 = vadd.f32 %v694_v26, %v572_v48  ;;  %v1889_v56 = vrot.slane %v3699_v21, %v3409_v11  ;;  %v1657_v60 = vmul.f32 %v1589_v22, %v1559_v44  ;;  %v1897_v61 = vrot.slane %v3699_v21, %v3411_v12  ;;  %v2004_v48 = vld [vmem:[%s3400_s23 + $0x90] sm:$0xf0] }
  0x9e   : > { %2962 = vmatpush1.msk.msra.mxu0 %vm907_vm0, %v894_v51  ;;  %v1809_v63 = vrot.slane %v1777_v52, 4  ;;  %v2027_v32 = vrot.slane %v3705_v55, %v3409_v11  ;;  %v1779_v59 = vmul.f32 %v1711_v27, %v1681_v41  ;;  %v2035_v1 = vrot.slane %v3705_v55, %v3411_v12  ;;  %v1561_v52 = vld [vmem:[%s3400_s23 + $0x28] sm:$0xf] }
  0x9f   : > { %v896_v35 = vadd.f32 %v864_v40, %v710_v57  ;;  %2963 = vmatmul.mubr.msk.f32.vlgmr.msra.gmra.mxu0 %vm903_vm1, %v3498_v54  ;;  %v1963_v3 = vmul.f32 %v1889_v56, %v1865_v53  ;;  %v1965_v4 = vmul.f32 %v1897_v61, %v1867_v45  ;;  %v1577_v5 = vrot.slane %v3568_v43, %v3413_v16  ;;  %v1683_v56 = vld [vmem:[%s3400_s23 + $0x28] sm:$0xf0] }
  0xa0   : > { %v1841_v30 = vadd.f32 %v1809_v63, %v1655_v42  ;;  %v2101_v7 = vmul.f32 %v2027_v32, %v2003_v58  ;;  %v1811_v8 = vrot.slane %v1779_v59, 4  ;;  %v2103_v9 = vmul.f32 %v2035_v1, %v2005_v62  ;;  %2292 = vmatprep.mubr.f32.mxu0 %v3215_v0  ;;  %v1869_v58 = vld [vmem:[%s3400_s23 + $0xa8] sm:$0xf]  ;;  %v2007_v32 = vld [vmem:[%s3400_s23 + $0xa8] sm:$0xf0] }
  0xa1   : > { %2965 = vmatpush1.msk.msra.mxu1 %vm907_vm0, %v896_v35  ;;  %v1654_v13 = vmul.f32 %v1577_v5, %v1556_v2  ;;  %v1699_v14 = vrot.slane %v3688_v49, %v3413_v16  ;;  %v1885_v15 = vrot.slane %v3699_v21, %v3413_v16  ;;  %v2023_v17 = vrot.slane %v3705_v55, %v3413_v16  ;;  %v1563_v59 = vld [vmem:[%s3400_s23 + $0x38] sm:$0xf] }
  0xa2   : > { %2966 = vmatmul.mubr.msk.f32.vlgmr.msra.gmra.mxu1 %vm903_vm1, %v3498_v54  ;;  %v1979_v23 = vadd.f32 %v1963_v3, %v1841_v30  ;;  %v2133_v47 = vrot.slane %v2101_v7, 4  ;;  %v1843_v25 = vadd.f32 %v1811_v8, %v1657_v60  ;;  %v2135_v26 = vrot.slane %v2103_v9, 4  ;;  %v1685_v7 = vld [vmem:[%s3400_s23 + $0x38] sm:$0xf0] }
  0xa3   : > { %v1776_v31 = vmul.f32 %v1699_v14, %v1678_v6  ;;  %v1962_v33 = vmul.f32 %v1885_v15, %v1864_v10  ;;  %v2100_v34 = vmul.f32 %v2023_v17, %v2002_v37  ;;  %v1585_v50 = vrot.slane %v3568_v43, %v3415_v18  ;;  %2363 = vmatprep.mubr.f32.mxu1 %v3215_v0  ;;  %v2009_v14 = vld [vmem:[%s3400_s23 + $0xb8] sm:$0xf0] }
  0xa4   : > { %v2165_v42 = vadd.f32 %v2133_v47, %v1979_v23  ;;  %v1981_v36 = vadd.f32 %v1965_v4, %v1843_v25  ;;  %v1707_v46 = vrot.slane %v3688_v49, %v3415_v18  ;;  %v1893_v44 = vrot.slane %v3699_v21, %v3415_v18  ;;  %v1560_v25 = vld [vmem:[%s3400_s23 + $0x20] sm:$0xf] }
  0xa5   : > { %v1808_v40 = vrot.slane %v1776_v31, 4  ;;  %v2132_v22 = vrot.slane %v2100_v34, 4  ;;  %v1656_v41 = vmul.f32 %v1585_v50, %v1558_v29  ;;  %v2031_v51 = vrot.slane %v3705_v55, %v3415_v18  ;;  %v1682_v34 = vld [vmem:[%s3400_s23 + $0x20] sm:$0xf0] }
  0xa6   : > { %2975 = vmatprep.subr.msk.mxu0 %vm907_vm0, %v2165_v42  ;;  %v2167_v53 = vadd.f32 %v2135_v26, %v1981_v36  ;;  %v1778_v27 = vmul.f32 %v1707_v46, %v1680_v38  ;;  %v1964_v45 = vmul.f32 %v1893_v44, %v1866_v39  ;;  %v1597_v57 = vrot.slane %v3568_v43, %v3417_v19  ;;  %v1868_v36 = vld [vmem:[%s3400_s23 + $0xa0] sm:$0xf] }
  0xa7   : > { %v1840_v60 = vadd.f32 %v1808_v40, %v1654_v13  ;;  %v2102_v61 = vmul.f32 %v2031_v51, %v2004_v48  ;;  %v1719_v62 = vrot.slane %v3688_v49, %v3417_v19  ;;  %v1905_v63 = vrot.slane %v3699_v21, %v3417_v19  ;;  %v1871_v13 = vld [vmem:[%s3400_s23 + $0xb8] sm:$0xf] }
  0xa8   : > { %2978 = vmatprep.subr.msk.mxu1 %vm907_vm0, %v2167_v53  ;;  %v1810_v1 = vrot.slane %v1778_v27, 4  ;;  %v1659_v2 = vmul.f32 %v1597_v57, %v1561_v52  ;;  %v2043_v35 = vrot.slane %v3705_v55, %v3417_v19  ;;  %v1605_v3 = vrot.slane %v3568_v43, %v3419_v20  ;;  %v1562_v27 = vld [vmem:[%s3400_s23 + $0x30] sm:$0xf] }
  0xa9   : > { %v1978_v4 = vadd.f32 %v1962_v33, %v1840_v60  ;;  %v2134_v5 = vrot.slane %v2102_v61, 4  ;;  %v1781_v6 = vmul.f32 %v1719_v62, %v1683_v56  ;;  %v1967_v30 = vmul.f32 %v1905_v63, %v1869_v58  ;;  %v2968_v61 = vld [vmem:[%s3390_s14 + $0x11] ss:$2 sm:$0xff]  ;;  %s3140_s14 = scalar_lea.vmem %s4016_s13, 4096 }
  0xaa   : > { %v1842_v8 = vadd.f32 %v1810_v1, %v1656_v41  ;;  %v2105_v9 = vmul.f32 %v2043_v35, %v2007_v32  ;;  %v1661_v10 = vmul.f32 %v1605_v3, %v1563_v59  ;;  %v1727_v37 = vrot.slane %v3688_v49, %v3419_v20  ;;  %v1870_v59 = vld [vmem:[%s3400_s23 + $0xb0] sm:$0xf]  ;;  %p3141_p13 = scmp.ne.s32.totalorder %s4016_s13, %s3140_s14 }
  0xab   : > { %v2164_v15 = vadd.f32 %v2132_v22, %v1978_v4  ;;  %v1813_v17 = vrot.slane %v1781_v6, 4  ;;  %v1913_v23 = vrot.slane %v3699_v21, %v3419_v20  ;;  %v2051_v47 = vrot.slane %v3705_v55, %v3419_v20  ;;  %v2006_v22 = vld [vmem:[%s3400_s23 + $0xa0] sm:$0xf0] }
  0xac   : > { %v1980_v26 = vadd.f32 %v1964_v45, %v1842_v8  ;;  %v2137_v29 = vrot.slane %v2105_v9, 4  ;;  %v1783_v31 = vmul.f32 %v1727_v37, %v1685_v7  ;;  %v1593_v33 = vrot.slane %v3568_v43, %v3423_v24  ;;  %v1684_v45 = vld [vmem:[%s3400_s23 + $0x30] sm:$0xf0]  ;;  %p3142_p4 = pnand %p3141_p13, %p4076_p6 }
  0xad   : > { %2976 = vmatpush1.msk.msra.mxu0 %vm907_vm0, %v2164_v15  ;;  %v1845_v50 = vadd.f32 %v1813_v17, %v1659_v2  ;;  %v1969_v38 = vmul.f32 %v1913_v23, %v1871_v13  ;;  %v2107_v39 = vmul.f32 %v2051_v47, %v2009_v14  ;;  %v1715_v42 = vrot.slane %v3688_v49, %v3423_v24  ;;  %v2008_v2 = vld [vmem:[%s3400_s23 + $0xb0] sm:$0xf0] }
  0xae   : > { %v2166_v46 = vadd.f32 %v2134_v5, %v1980_v26  ;;  %2977 = vmatmul.mubr.msk.f32.vlgmr.msra.gmra.mxu0 %vm903_vm1, %v3498_v54  ;;  %v1815_v44 = vrot.slane %v1783_v31, 4  ;;  %v1658_v48 = vmul.f32 %v1593_v33, %v1560_v25  ;;  %v1901_v40 = vrot.slane %v3699_v21, %v3423_v24  ;;  %p3143_p7 = pneg %p3142_p4 }
  0xaf   : > { %v1983_v41 = vadd.f32 %v1967_v30, %v1845_v50  ;;  %v2139_v51 = vrot.slane %v2107_v39, 4  ;;  %v1780_v52 = vmul.f32 %v1715_v42, %v1682_v34  ;;  %v2039_v53 = vrot.slane %v3705_v55, %v3423_v24  ;;  %2434 = vmatprep.mubr.f32.mxu0 %v3215_v0  ;;  %v1565_v42 = vld [vmem:[%s3400_s23 + $0x48] sm:$0xf] }
  0xb0   : > { %2979 = vmatpush1.msk.msra.mxu1 %vm907_vm0, %v2166_v46  ;;  %v1847_v57 = vadd.f32 %v1815_v44, %v1661_v10  ;;  %v1966_v56 = vmul.f32 %v1901_v40, %v1868_v36  ;;  %v1601_v58 = vrot.slane %v3568_v43, %v3427_v28  ;;  %v1723_v60 = vrot.slane %v3688_v49, %v3427_v28 }
  0xb1   : > { %2980 = vmatmul.mubr.msk.f32.vlgmr.msra.gmra.mxu1 %vm903_vm1, %v3498_v54  ;;  %v2169_v62 = vadd.f32 %v2137_v29, %v1983_v41  ;;  %v1812_v63 = vrot.slane %v1780_v52, 4  ;;  %v2104_v32 = vmul.f32 %v2039_v53, %v2006_v22  ;;  %v1909_v1 = vrot.slane %v3699_v21, %v3427_v28  ;;  %v1567_v52 = vld [vmem:[%s3400_s23 + $0x58] sm:$0xf] }
  0xb2   : > { %v1985_v35 = vadd.f32 %v1969_v38, %v1847_v57  ;;  %v1660_v3 = vmul.f32 %v1601_v58, %v1562_v27  ;;  %v1782_v4 = vmul.f32 %v1723_v60, %v1684_v45  ;;  %v2047_v43 = vrot.slane %v3705_v55, %v3427_v28  ;;  %2505 = vmatprep.mubr.f32.mxu1 %v3215_v0  ;;  %v1689_v58 = vld [vmem:[%s3400_s23 + $0x58] sm:$0xf0] }
  0xb3   : > { %2981 = vmatprep.subr.msk.mxu0 %vm907_vm0, %v2169_v62  ;;  %v1844_v49 = vadd.f32 %v1812_v63, %v1658_v48  ;;  %v2136_v5 = vrot.slane %v2104_v32, 4  ;;  %v1545_v6 = vmax.f32 %v2968_v61, 0.0  ;;  %v1968_v8 = vmul.f32 %v1909_v1, %v1870_v59  ;;  %v1687_v48 = vld [vmem:[%s3400_s23 + $0x48] sm:$0xf0]  ;;  %v2013_v60 = vld [vmem:[%s3400_s23 + $0xd8] sm:$0xf0] }
  0xb4   : > { %v2171_v30 = vadd.f32 %v2139_v51, %v1985_v35  ;;  %v1814_v7 = vrot.slane %v1782_v4, 4  ;;  %v2106_v9 = vmul.f32 %v2047_v43, %v2008_v2  ;;  %v2011_v51 = vld [vmem:[%s3400_s23 + $0xc8] sm:$0xf0]  ;;  %v1564_v61 = vld [vmem:[%s3400_s23 + $0x40] sm:$0xf] }
  0xb5   : > { %v1982_v10 = vadd.f32 %v1966_v56, %v1844_v49  ;;  %v1547_v21 = vmin.f32 %v1545_v6, 1.0  ;;  %v1686_v2 = vld [vmem:[%s3400_s23 + $0x40] sm:$0xf0]  ;;  %v1875_v43 = vld [vmem:[%s3400_s23 + $0xd8] sm:$0xf] }
  0xb6   : > { %2984 = vmatprep.subr.msk.mxu1 %vm907_vm0, %v2171_v30  ;;  %v1846_v37 = vadd.f32 %v1814_v7, %v1660_v3  ;;  %v2138_v13 = vrot.slane %v2106_v9, 4  ;;  %v1872_v7 = vld [vmem:[%s3400_s23 + $0xc0] sm:$0xf] }
  0xb7   : > { %v2168_v14 = vadd.f32 %v2136_v5, %v1982_v10  ;;  %v1549_v15 = vmul.f32 3.0, %v1547_v21 }
  0xb8   : > { %v1984_v55 = vadd.f32 %v1968_v8, %v1846_v37  ;;  %v2010_v8 = vld [vmem:[%s3400_s23 + $0xc0] sm:$0xf0]  ;;  %v1566_v37 = vld [vmem:[%s3400_s23 + $0x50] sm:$0xf] }
  0xb9   : > { %2982 = vmatpush1.msk.msra.mxu0 %vm907_vm0, %v2168_v14  ;;  %v1551_v17 = vand.u32 2147483647, %v1549_v15  ;;  %v2970_v23 = vadd.f32 -1.0, %v1549_v15  ;;  %v2972_v47 = vadd.f32 -2.0, %v1549_v15  ;;  %v2974_v25 = vadd.f32 -3.0, %v1549_v15 }
  0xba   : > { %v2170_v26 = vadd.f32 %v2138_v13, %v1984_v55  ;;  %2983 = vmatmul.mubr.msk.f32.vlgmr.msra.gmra.mxu0 %vm903_vm1, %v3498_v54 }
  0xbb   : > { %v1553_v29 = vsub.f32 1.0, %v1551_v17  ;;  %v1673_v31 = vand.u32 2147483647, %v2970_v23  ;;  %v1859_v33 = vand.u32 2147483647, %v2972_v47  ;;  %2576 = vmatprep.mubr.f32.mxu0 %v3215_v0 }
  0xbc   : > { %2985 = vmatpush1.msk.msra.mxu1 %vm907_vm0, %v2170_v26  ;;  %v1997_v34 = vand.u32 2147483647, %v2974_v25  ;;  %v1688_v17 = vld [vmem:[%s3400_s23 + $0x50] sm:$0xf0] }
  0xbd   : > { %2986 = vmatmul.mubr.msk.f32.vlgmr.msra.gmra.mxu1 %vm903_vm1, %v3498_v54  ;;  %v3820_v50 = vmax.f32 %v1553_v29, 0.0  ;;  %v1675_v38 = vsub.f32 1.0, %v1673_v31  ;;  %v1861_v39 = vsub.f32 1.0, %v1859_v33  ;;  %v1873_v54 = vld [vmem:[%s3400_s23 + $0xc8] sm:$0xf] }
  0xbe   : > { %v1999_v36 = vsub.f32 1.0, %v1997_v34  ;;  %2647 = vmatprep.mubr.f32.mxu1 %v3215_v0  ;;  %v2012_v29 = vld [vmem:[%s3400_s23 + $0xd0] sm:$0xf0]  ;;  %v1569_v31 = vld [vmem:[%s3400_s23 + $0x68] sm:$0xf] }
  0xbf   : > { %v1613_v46 = vrot.slane %v3820_v50, %v3409_v11  ;;  %v3826_v44 = vmax.f32 %v1675_v38, 0.0  ;;  %v3829_v40 = vmax.f32 %v1861_v39, 0.0  ;;  %v1621_v22 = vrot.slane %v3820_v50, %v3411_v12 }
  0xc0   : > { %v3834_v41 = vmax.f32 %v1999_v36, 0.0  ;;  %v1609_v53 = vrot.slane %v3820_v50, %v3413_v16  ;;  %v1617_v27 = vrot.slane %v3820_v50, %v3415_v18  ;;  %v1629_v62 = vrot.slane %v3820_v50, %v3417_v19 }
  0xc1   : > { %v1663_v45 = vmul.f32 %v1613_v46, %v1565_v42  ;;  %v1735_v57 = vrot.slane %v3826_v44, %v3409_v11  ;;  %v1921_v56 = vrot.slane %v3829_v40, %v3409_v11  ;;  %v1743_v32 = vrot.slane %v3826_v44, %v3411_v12 }
  0xc2   : > { %v2059_v63 = vrot.slane %v3834_v41, %v3409_v11  ;;  %v1929_v59 = vrot.slane %v3829_v40, %v3411_v12  ;;  %v2067_v1 = vrot.slane %v3834_v41, %v3411_v12  ;;  %v1665_v4 = vmul.f32 %v1621_v22, %v1567_v52 }
  0xc3   : > { %v1785_v35 = vmul.f32 %v1735_v57, %v1687_v48  ;;  %v1971_v3 = vmul.f32 %v1921_v56, %v1873_v54  ;;  %v1731_v49 = vrot.slane %v3826_v44, %v3413_v16  ;;  %v1787_v5 = vmul.f32 %v1743_v32, %v1689_v58  ;;  %v1874_v48 = vld [vmem:[%s3400_s23 + $0xd0] sm:$0xf]  ;;  %v2015_v58 = vld [vmem:[%s3400_s23 + $0xe8] sm:$0xf0] }
  0xc4   : > { %v2109_v11 = vmul.f32 %v2059_v63, %v2011_v51  ;;  %v2111_v6 = vmul.f32 %v2067_v1, %v2013_v60  ;;  %v1662_v30 = vmul.f32 %v1609_v53, %v1564_v61  ;;  %v1917_v10 = vrot.slane %v3829_v40, %v3413_v16  ;;  %v1691_v53 = vld [vmem:[%s3400_s23 + $0x68] sm:$0xf0]  ;;  %v1877_v63 = vld [vmem:[%s3400_s23 + $0xe8] sm:$0xf] }
  0xc5   : > { %v1817_v9 = vrot.slane %v1785_v35, 4  ;;  %v1784_v12 = vmul.f32 %v1731_v49, %v1686_v2  ;;  %v2055_v21 = vrot.slane %v3834_v41, %v3413_v16  ;;  %v1819_v14 = vrot.slane %v1787_v5, 4  ;;  %v1571_v2 = vld [vmem:[%s3400_s23 + $0x78] sm:$0xf]  ;;  %v2017_v5 = vld [vmem:[%s3400_s23 + $0xf8] sm:$0xf0] }
  0xc6   : > { %v2141_v13 = vrot.slane %v2109_v11, 4  ;;  %v1973_v15 = vmul.f32 %v1929_v59, %v1875_v43  ;;  %v2143_v55 = vrot.slane %v2111_v6, 4  ;;  %v1970_v25 = vmul.f32 %v1917_v10, %v1872_v7 }
  0xc7   : > { %v1849_v23 = vadd.f32 %v1817_v9, %v1663_v45  ;;  %v1816_v47 = vrot.slane %v1784_v12, 4  ;;  %v2108_v26 = vmul.f32 %v2055_v21, %v2010_v8  ;;  %v1851_v33 = vadd.f32 %v1819_v14, %v1665_v4  ;;  %v3083_v12 = vld [vmem:[%s4062_s0] sm:$0xff] }
  0xc8   : > { %v1739_v34 = vrot.slane %v3826_v44, %v3415_v18  ;;  %v1925_v16 = vrot.slane %v3829_v40, %v3415_v18  ;;  %v2063_v38 = vrot.slane %v3834_v41, %v3415_v18  ;;  %v1664_v46 = vmul.f32 %v1617_v27, %v1566_v37  ;;  %v1690_v14 = vld [vmem:[%s3400_s23 + $0x60] sm:$0xf0] }
  0xc9   : > { %v1987_v39 = vadd.f32 %v1971_v3, %v1849_v23  ;;  %v1848_v42 = vadd.f32 %v1816_v47, %v1662_v30  ;;  %v2140_v36 = vrot.slane %v2108_v26, 4  ;;  %v1989_v54 = vadd.f32 %v1973_v15, %v1851_v33  ;;  %v1693_v3 = vld [vmem:[%s3400_s23 + $0x78] sm:$0xf0]  ;;  %v2014_v23 = vld [vmem:[%s3400_s23 + $0xe0] sm:$0xf0] }
  0xca   : > { %v1786_v22 = vmul.f32 %v1739_v34, %v1688_v17  ;;  %v2110_v51 = vmul.f32 %v2063_v38, %v2012_v29  ;;  %v1667_v52 = vmul.f32 %v1629_v62, %v1569_v31  ;;  %v1751_v56 = vrot.slane %v3826_v44, %v3417_v19  ;;  %v1876_v26 = vld [vmem:[%s3400_s23 + $0xe0] sm:$0xf]  ;;  %v1570_v38 = vld [vmem:[%s3400_s23 + $0x70] sm:$0xf] }
  0xcb   : > { %v2173_v45 = vadd.f32 %v2141_v13, %v1987_v39  ;;  %v1986_v57 = vadd.f32 %v1970_v25, %v1848_v42  ;;  %v1937_v18 = vrot.slane %v3829_v40, %v3417_v19  ;;  %v2175_v60 = vadd.f32 %v2143_v55, %v1989_v54  ;;  %v1568_v13 = vld [vmem:[%s3400_s23 + $0x60] sm:$0xf]  ;;  %v1692_v42 = vld [vmem:[%s3400_s23 + $0x70] sm:$0xf0] }
  0xcc   : > { %v1818_v27 = vrot.slane %v1786_v22, 4  ;;  %v1972_v61 = vmul.f32 %v1925_v16, %v1874_v48  ;;  %v2075_v62 = vrot.slane %v3834_v41, %v3417_v19  ;;  %v2142_v59 = vrot.slane %v2110_v51, 4  ;;  %v1879_v19 = vld [vmem:[%s3400_s23 + $0xf8] sm:$0xf] }
  0xcd   : > { %2987 = vmatprep.subr.msk.mxu0 %vm907_vm0, %v2173_v45  ;;  %v2172_v32 = vadd.f32 %v2140_v36, %v1986_v57  ;;  %v1789_v1 = vmul.f32 %v1751_v56, %v1691_v53  ;;  %v1637_v35 = vrot.slane %v3820_v50, %v3419_v20  ;;  %2990 = vmatprep.subr.msk.mxu1 %vm907_vm0, %v2175_v60  ;;  %v2016_v45 = vld [vmem:[%s3400_s23 + $0xf0] sm:$0xf0] }
  0xce   : > { %v1850_v4 = vadd.f32 %v1818_v27, %v1664_v46  ;;  %v2113_v43 = vmul.f32 %v2075_v62, %v2015_v58  ;;  %v1759_v49 = vrot.slane %v3826_v44, %v3419_v20  ;;  %v1945_v11 = vrot.slane %v3829_v40, %v3419_v20 }
  0xcf   : > { %2988 = vmatpush1.msk.msra.mxu0 %vm907_vm0, %v2172_v32  ;;  %v1821_v6 = vrot.slane %v1789_v1, 4  ;;  %v1975_v30 = vmul.f32 %v1937_v18, %v1877_v63  ;;  %v2083_v7 = vrot.slane %v3834_v41, %v3419_v20  ;;  %v1625_v8 = vrot.slane %v3820_v50, %v3423_v24 }
  0xd0   : > { %v1988_v9 = vadd.f32 %v1972_v61, %v1850_v4  ;;  %2989 = vmatmul.mubr.msk.f32.vlgmr.msra.gmra.mxu0 %vm903_vm1, %v3083_v12  ;;  %v2145_v10 = vrot.slane %v2113_v43, 4  ;;  %v1669_v21 = vmul.f32 %v1637_v35, %v1571_v2  ;;  %v1791_v37 = vmul.f32 %v1759_v49, %v1693_v3 }
  0xd1   : > { %v1853_v15 = vadd.f32 %v1821_v6, %v1667_v52  ;;  %v1977_v20 = vmul.f32 %v1945_v11, %v1879_v19  ;;  %v2115_v55 = vmul.f32 %v2083_v7, %v2017_v5  ;;  %v1747_v17 = vrot.slane %v3826_v44, %v3423_v24  ;;  %2718 = vmatprep.mubr.f32.mxu0 %v3215_v0  ;;  %v1878_v52 = vld [vmem:[%s3400_s23 + $0xf0] sm:$0xf]  ;;  %s3146_s23 = scalar_lea.vmem %s3145_s11, 8192 }
  0xd2   : > { %v2174_v47 = vadd.f32 %v2142_v59, %v1988_v9  ;;  %v1823_v25 = vrot.slane %v1791_v37, 4  ;;  %v1933_v29 = vrot.slane %v3829_v40, %v3423_v24  ;;  %v2071_v31 = vrot.slane %v3834_v41, %v3423_v24  ;;  %p3148_p10 = scmp.lt.s32.totalorder %s3146_s23, %s3140_s14 }
  0xd3   : > { %v1991_v33 = vadd.f32 %v1975_v30, %v1853_v15  ;;  %v1666_v34 = vmul.f32 %v1625_v8, %v1568_v13  ;;  %v1788_v16 = vmul.f32 %v1747_v17, %v1690_v14  ;;  %v1633_v39 = vrot.slane %v3820_v50, %v3427_v28 }
  0xd4   : > { %2991 = vmatpush1.msk.msra.mxu1 %vm907_vm0, %v2174_v47  ;;  %v1855_v36 = vadd.f32 %v1823_v25, %v1669_v21  ;;  %v2147_v46 = vrot.slane %v2115_v55, 4  ;;  %v2112_v48 = vmul.f32 %v2071_v31, %v2014_v23  ;;  %v1755_v54 = vrot.slane %v3826_v44, %v3427_v28  ;;  %p3149_p0 = por %p3148_p10, %p3147_p8 }
  0xd5   : > { %2992 = vmatmul.mubr.msk.f32.vlgmr.msra.gmra.mxu1 %vm903_vm1, %v3083_v12  ;;  %v2177_v24 = vadd.f32 %v2145_v10, %v1991_v33  ;;  %v1820_v22 = vrot.slane %v1788_v16, 4  ;;  %v1974_v51 = vmul.f32 %v1933_v29, %v1876_v26  ;;  %v1941_v53 = vrot.slane %v3829_v40, %v3427_v28 }
  0xd6   : > { %v1993_v50 = vadd.f32 %v1977_v20, %v1855_v36  ;;  %v1668_v57 = vmul.f32 %v1633_v39, %v1570_v38  ;;  %v1790_v56 = vmul.f32 %v1755_v54, %v1692_v42  ;;  %v2079_v18 = vrot.slane %v3834_v41, %v3427_v28  ;;  %2789 = vmatprep.mubr.f32.mxu1 %v3215_v0  ;;  %p3150_p2 = pnand %p3149_p0, %p3143_p7 }
  0xd7   : > { %2993 = vmatprep.subr.msk.mxu0 %vm907_vm0, %v2177_v24  ;;  %v1852_v44 = vadd.f32 %v1820_v22, %v1666_v34  ;;  %v2144_v58 = vrot.slane %v2112_v48, 4  ;;  %v1976_v61 = vmul.f32 %v1941_v53, %v1878_v52 }
  0xd8   : > { %v2179_v60 = vadd.f32 %v2147_v46, %v1993_v50  ;;  %v1822_v27 = vrot.slane %v1790_v56, 4  ;;  %v2114_v63 = vmul.f32 %v2079_v18, %v2016_v45 }
  0xd9   : > { %v1990_v62 = vadd.f32 %v1974_v51, %v1852_v44 }
  0xda   : > { %2996 = vmatprep.subr.msk.mxu1 %vm907_vm0, %v2179_v60  ;;  %v1854_v40 = vadd.f32 %v1822_v27, %v1668_v57  ;;  %v2146_v32 = vrot.slane %v2114_v63, 4 }
  0xdb   : > { %v2176_v59 = vadd.f32 %v2144_v58, %v1990_v62 }
  0xdc   : > { %v1992_v1 = vadd.f32 %v1976_v61, %v1854_v40 }
  0xdd   : > { %2994 = vmatpush1.msk.msra.mxu0 %vm907_vm0, %v2176_v59 }
  0xde   : > { %v2178_v28 = vadd.f32 %v2146_v32, %v1992_v1  ;;  %2995 = vmatmul.mubr.msk.f32.vlgmr.msra.gmra.mxu0 %vm903_vm1, %v3083_v12 }
  0xe0   : > { %2997 = vmatpush1.msk.msra.mxu1 %vm907_vm0, %v2178_v28 }
  0xe1   : > { %2998 = vmatmul.mubr.msk.f32.vlgmr.msra.gmra.mxu1 %vm903_vm1, %v3083_v12 }
  0xf2   : > { %v3942_v0 = vpop.permute.xlu0 %900 }
 0x12d   : > { %v1022_v41 = vpop.f32.mrf.mxu0 }
 0x12e   : > { %v1023_v2 = vadd.f32 %v1022_v41, %v3942_v0 }
 0x12f   : > { %v1024_v35 = vpop.f32.mrf.mxu0 }
 0x130   : > { %1524 = vst [vmem:[%s3947_s25] sm:$0xff] %v1023_v2  ;;  %v1025_v3 = vadd.f32 %v1024_v35, %v3942_v0 }
 0x132   : > { %v1093_v4 = vpop.f32.mrf.mxu1  ;;  %1525 = vst [vmem:[%s3947_s25 + $0x8] sm:$0xff] %v1025_v3 }
 0x133   : > { %v1094_v43 = vadd.f32 %v1093_v4, %v3942_v0 }
 0x134   : > { %v1095_v49 = vpop.f32.mrf.mxu1 }
 0x135   : > { %1526 = vst [vmem:[%s3947_s25 + $0x10] sm:$0xff] %v1094_v43  ;;  %v1096_v19 = vadd.f32 %v1095_v49, %v3942_v0 }
 0x137   : > { %1527 = vst [vmem:[%s3947_s25 + $0x18] sm:$0xff] %v1096_v19 }
 0x13b   : > { %v1164_v11 = vpop.f32.mrf.mxu0 }
 0x13c   : > { %v1165_v5 = vadd.f32 %v1164_v11, %v3942_v0 }
 0x13d   : > { %v1166_v6 = vpop.f32.mrf.mxu0 }
 0x13e   : > { %1528 = vst [vmem:[%s3947_s25 + $0x20] sm:$0xff] %v1165_v5  ;;  %v1235_v30 = vpop.f32.mrf.mxu1  ;;  %v1167_v7 = vadd.f32 %v1166_v6, %v3942_v0 }
 0x13f   : > { %v1236_v8 = vadd.f32 %v1235_v30, %v3942_v0 }
 0x140   : > { %1529 = vst [vmem:[%s3947_s25 + $0x28] sm:$0xff] %v1167_v7  ;;  %v1237_v9 = vpop.f32.mrf.mxu1 }
 0x141   : > { %1530 = vst [vmem:[%s3947_s25 + $0x30] sm:$0xff] %v1236_v8  ;;  %v1238_v12 = vadd.f32 %v1237_v9, %v3942_v0 }
 0x143   : > { %1531 = vst [vmem:[%s3947_s25 + $0x38] sm:$0xff] %v1238_v12 }
 0x151   : > { %v1306_v10 = vpop.f32.mrf.mxu0 }
 0x152   : > { %v1307_v21 = vadd.f32 %v1306_v10, %v3942_v0 }
 0x153   : > { %v1308_v37 = vpop.f32.mrf.mxu0 }
 0x154   : > { %1532 = vst [vmem:[%s3947_s25 + $0x40] sm:$0xff] %v1307_v21  ;;  %v1309_v13 = vadd.f32 %v1308_v37, %v3942_v0 }
 0x156   : > { %v1377_v14 = vpop.f32.mrf.mxu1  ;;  %1533 = vst [vmem:[%s3947_s25 + $0x48] sm:$0xff] %v1309_v13 }
 0x157   : > { %v1378_v15 = vadd.f32 %v1377_v14, %v3942_v0 }
 0x158   : > { %v1379_v20 = vpop.f32.mrf.mxu1 }
 0x159   : > { %1534 = vst [vmem:[%s3947_s25 + $0x50] sm:$0xff] %v1378_v15  ;;  %v1380_v55 = vadd.f32 %v1379_v20, %v3942_v0 }
 0x15b   : > { %1535 = vst [vmem:[%s3947_s25 + $0x58] sm:$0xff] %v1380_v55 }
 0x15f   : > { %v1448_v17 = vpop.f32.mrf.mxu0 }
 0x160   : > { %v1449_v23 = vadd.f32 %v1448_v17, %v3942_v0 }
 0x161   : > { %v1450_v47 = vpop.f32.mrf.mxu0 }
 0x162   : > { %1536 = vst [vmem:[%s3947_s25 + $0x60] sm:$0xff] %v1449_v23  ;;  %v1519_v25 = vpop.f32.mrf.mxu1  ;;  %v1451_v26 = vadd.f32 %v1450_v47, %v3942_v0 }
 0x163   : > { %v1520_v29 = vadd.f32 %v1519_v25, %v3942_v0 }
 0x164   : > { %1537 = vst [vmem:[%s3947_s25 + $0x68] sm:$0xff] %v1451_v26  ;;  %v1521_v31 = vpop.f32.mrf.mxu1 }
 0x165   : > { %1538 = vst [vmem:[%s3947_s25 + $0x70] sm:$0xff] %v1520_v29  ;;  %v1522_v33 = vadd.f32 %v1521_v31, %v3942_v0 }
 0x167   : > { %1539 = vst [vmem:[%s3947_s25 + $0x78] sm:$0xff] %v1522_v33 }
 0x16e   : > { %v2294_v34 = vpop.f32.mrf.mxu0 }
 0x16f   : > { %v2295_v16 = vadd.f32 %v2294_v34, %v3942_v0 }
 0x170   : > { %v2296_v38 = vpop.f32.mrf.mxu0 }
 0x171   : > { %2999 = vst [vmem:[%s3947_s25 + $0x80] sm:$0xff] %v2295_v16  ;;  %v2365_v39 = vpop.f32.mrf.mxu1  ;;  %v2297_v42 = vadd.f32 %v2296_v38, %v3942_v0 }
 0x172   : > { %v2366_v36 = vadd.f32 %v2365_v39, %v3942_v0 }
 0x173   : > { %3000 = vst [vmem:[%s3947_s25 + $0x88] sm:$0xff] %v2297_v42  ;;  %v2367_v46 = vpop.f32.mrf.mxu1 }
 0x174   : > { %3001 = vst [vmem:[%s3947_s25 + $0x90] sm:$0xff] %v2366_v36  ;;  %v2368_v48 = vadd.f32 %v2367_v46, %v3942_v0 }
 0x176   : > { %3002 = vst [vmem:[%s3947_s25 + $0x98] sm:$0xff] %v2368_v48 }
 0x17a   : > { %v2436_v54 = vpop.f32.mrf.mxu0 }
 0x17b   : > { %v2437_v24 = vadd.f32 %v2436_v54, %v3942_v0 }
 0x17c   : > { %v2438_v22 = vpop.f32.mrf.mxu0 }
 0x17d   : > { %3003 = vst [vmem:[%s3947_s25 + $0xa0] sm:$0xff] %v2437_v24  ;;  %v2507_v51 = vpop.f32.mrf.mxu1  ;;  %v2439_v52 = vadd.f32 %v2438_v22, %v3942_v0 }
 0x17e   : > { %v2508_v53 = vadd.f32 %v2507_v51, %v3942_v0 }
 0x17f   : > { %3004 = vst [vmem:[%s3947_s25 + $0xa8] sm:$0xff] %v2439_v52  ;;  %v2509_v45 = vpop.f32.mrf.mxu1 }
 0x180   : > { %3005 = vst [vmem:[%s3947_s25 + $0xb0] sm:$0xff] %v2508_v53  ;;  %v2510_v50 = vadd.f32 %v2509_v45, %v3942_v0 }
 0x182   : > { %3006 = vst [vmem:[%s3947_s25 + $0xb8] sm:$0xff] %v2510_v50 }
 0x190   : > { %v2578_v57 = vpop.f32.mrf.mxu0 }
 0x191   : > { %v2579_v56 = vadd.f32 %v2578_v57, %v3942_v0 }
 0x192   : > { %v2580_v18 = vpop.f32.mrf.mxu0 }
 0x193   : > { %3007 = vst [vmem:[%s3947_s25 + $0xc0] sm:$0xff] %v2579_v56  ;;  %v2581_v44 = vadd.f32 %v2580_v18, %v3942_v0 }
 0x195   : > { %v2649_v58 = vpop.f32.mrf.mxu1  ;;  %3008 = vst [vmem:[%s3947_s25 + $0xc8] sm:$0xff] %v2581_v44 }
 0x196   : > { %v2650_v60 = vadd.f32 %v2649_v58, %v3942_v0 }
 0x197   : > { %v2651_v27 = vpop.f32.mrf.mxu1 }
 0x198   : > { %3009 = vst [vmem:[%s3947_s25 + $0xd0] sm:$0xff] %v2650_v60  ;;  %v2652_v61 = vadd.f32 %v2651_v27, %v3942_v0 }
 0x19a   : > { %3010 = vst [vmem:[%s3947_s25 + $0xd8] sm:$0xff] %v2652_v61 }
 0x19e   : > { %v2720_v63 = vpop.f32.mrf.mxu0 }
 0x19f   : > { %v2721_v62 = vadd.f32 %v2720_v63, %v3942_v0 }
 0x1a0   : > { %v2722_v40 = vpop.f32.mrf.mxu0 }
 0x1a1   : > { %3011 = vst [vmem:[%s3947_s25 + $0xe0] sm:$0xff] %v2721_v62  ;;  %v2791_v32 = vpop.f32.mrf.mxu1  ;;  %v2723_v59 = vadd.f32 %v2722_v40, %v3942_v0 }
 0x1a2   : > { %v2792_v1 = vadd.f32 %v2791_v32, %v3942_v0 }
 0x1a3   : > { %3012 = vst [vmem:[%s3947_s25 + $0xe8] sm:$0xff] %v2723_v59  ;;  %v2793_v28 = vpop.f32.mrf.mxu1 }
 0x1a4   : > { %3013 = vst [vmem:[%s3947_s25 + $0xf0] sm:$0xff] %v2792_v1  ;;  %v2794_v41 = vadd.f32 %v2793_v28, %v3942_v0 }
 0x1a6   : > { %3014 = vst [vmem:[%s3947_s25 + $0xf8] sm:$0xff] %v2794_v41 }
 0x1a7   : > { %3153 = shalt.err (!%p3150_p2)
}
 0x1a8   : > { %s3154_s26 = scalar_lea.hbm %s4013_s12, 4096  ;;  %s3158_s8 = scalar_lea.hbm %s4066_s4, 8192 }
 0x1a9   : > { %p3155_p9 = scmp.ne.s32.totalorder %s4013_s12, %s3154_s26  ;;  %p3159_p12 = scmp.lt.s32.totalorder %s4013_s12, %s4066_s4 }
 0x1aa   : > { %p3160_p5 = scmp.lt.s32.totalorder %s3158_s8, %s3154_s26 }
 0x1ab   : > { %p3156_p3 = pnand %p3155_p9, %p4076_p6 }
 0x1ac   : > { %p3161_p1 = por %p3160_p5, %p3159_p12 }
 0x1ad   : > { %p3157_p11 = pneg %p3156_p3 }
 0x1af   : > { %p3162_p13 = pnand %p3161_p1, %p3157_p11 }
 0x1b1   : > { %3165 = shalt.err (!%p3162_p13)
}
 0x1b2   : > { %s3218_s25 = smov 2048   ;;  %s3219_s10 = smov 4096  }
 0x1b3   : > { %s3220_s6 = smov 128  }
 0x1b4   : > { %3027 = dma.vmem_to_hbm [thread:$0]  (%p4076_p6), %s4016_s13, 4096, %s4013_s12, %s2814_s19, %s3218_s25, %s3219_s10, %s3220_s6  }
 0x1b5 PF: > { %s2842_s9 = sand.u32 1, %s3196_s15   ;;  %p4077_p4 = scmp.ne.s32.totalorder %s4072_s28, 0 }
 0x1b6   : > { %p4078_p7 = scmp.ge.s32.totalorder %s3208_s18, 2  ;;  %s2843_s14 = scalar_lea.sflag [#allocation4], %s2842_s9 }
 0x1b8   : > { %p3037_p8 = pnand %p4078_p7, %p4077_p4 }
 0x1ba   : > { %p3038_p10 = pneg %p3037_p8 }
 0x1bc   : > { %3191 = dma.done.wait (%p3038_p10), %s2843_s14, 4096  }
 0x1bd   : > { %3193 = vsyncadd (%p3038_p10), %s2843_s14, 4294963200  ;;  %p20_p0 = scmp.ge.s32.totalorder %s3271_s21, 4   ;;  %s4079_s15 = smov %s3200_s16 }
 0x1be   : > { %s4080_s16 = smov %s3204_s17  ;;  %s4081_s17 = smov %s3283_s24 }
 0x1bf   : > { %s4082_s18 = smov %s3271_s21  ;;  %22 = sbr.rel (!%p20_p0) target bundleno = 7 (0x7), region = 98 }
 0x1c4   :  { %2848 = vsyncpa [#allocation3], 1 }
 0x1c5   :  { %2850 = vsyncpa [#allocation3 + $0x1], 1 }
 0x1c6   :  { %2851 = vsyncpa [#allocation6], 1 }
 0x1c7   :  { %2853 = vsyncpa [#allocation6 + $0x1], 1 }
 0x1c8   :  { %2854 = vsyncpa [#allocation4], 1 }
 0x1c9   :  { %2856 = vsyncpa [#allocation4 + $0x1], 1 }

</bundles_post_ra>
